<compile_context>
chip_gen: v7x
topology: tpu7x:2x2x1
jax: 0.10.0
libtpu: 0.0.40
codegen_flags: <defaults>
</compile_context>

<pallas_src>
import math

import jax
import jax.numpy as jnp
from jax.experimental import pallas as pl
from jax.experimental.pallas import tpu as pltpu

D_MODEL = 32
N_HEADS = 4
D_K = D_MODEL // N_HEADS
D_FF = 64
NUM_LAYERS = 2
EPS = 1e-5
NEG_INF = -1e30


# ------------------------------- Pallas kernel ------------------------------- #

def encoder_kernel(x_ref, bias_ref, wqkv_ref, wo_ref, w1_ref, b1_ref,
                   w2_ref, b2_ref, ln_ref, o_ref):
    # x_ref:    (N, D)        residual stream, N = B*S
    # bias_ref: (N, N)        additive attention bias (0 / -1e30), block-diagonal
    # wqkv_ref: (L, D, 3D)    fused Q/K/V projection per layer
    # wo_ref:   (L, D, D)
    # w1_ref:   (L, D, D_FF)   b1_ref: (L, 1, D_FF)
    # w2_ref:   (L, D_FF, D)   b2_ref: (L, 1, D)
    # ln_ref:   SMEM (4L + 2,) scalars: per layer [a1, b1, a2, b2], then final [a, b]
    x = x_ref[...]
    attn_bias = bias_ref[...]
    scale = 1.0 / math.sqrt(D_K)

    def layer_norm(v, off):
        alpha = ln_ref[off]
        beta = ln_ref[off + 1]
        mean = jnp.mean(v, axis=-1, keepdims=True)
        # torch.std(dim=-1) is the unbiased estimator (ddof=1)
        var = jnp.sum((v - mean) ** 2, axis=-1, keepdims=True) * (1.0 / (D_MODEL - 1))
        inv = pl.reciprocal(jnp.sqrt(var) + EPS, approx=True)
        return alpha * (v - mean) * inv + beta

    for l in range(NUM_LAYERS):                               # static unroll, L=2
        # ---- pre-norm self-attention + residual ----
        xn = layer_norm(x, 4 * l)
        wqkv = wqkv_ref[l]                                    # (D, 3D)
        wo = wo_ref[l]                                        # (D, D)
        qkv = jnp.dot(xn, wqkv, preferred_element_type=jnp.float32)   # (N, 3D)

        attn = jnp.zeros_like(x)
        for h in range(N_HEADS):                              # static unroll, H=4
            lo = h * D_K
            q_h = qkv[:, lo:lo + D_K]
            k_h = qkv[:, D_MODEL + lo:D_MODEL + lo + D_K]
            v_h = qkv[:, 2 * D_MODEL + lo:2 * D_MODEL + lo + D_K]
            # scores = q_h @ k_h.T without materializing a transpose
            s = jax.lax.dot_general(q_h, k_h, (((1,), (1,)), ((), ())),
                                    preferred_element_type=jnp.float32)
            s = s * scale + attn_bias
            s = s - jnp.max(s, axis=-1, keepdims=True)
            p = jnp.exp(s)
            p = p * pl.reciprocal(jnp.sum(p, axis=-1, keepdims=True), approx=True)
            o_h = jnp.dot(p, v_h, preferred_element_type=jnp.float32)     # (N, D_K)
            # "concat heads" folded into per-head row-block of W_o (sublane-aligned)
            attn = attn + jnp.dot(o_h, wo[lo:lo + D_K, :],
                                  preferred_element_type=jnp.float32)
        x = x + attn

        # ---- pre-norm feed-forward + residual ----
        xn = layer_norm(x, 4 * l + 2)
        h1 = jnp.dot(xn, w1_ref[l], preferred_element_type=jnp.float32) + b1_ref[l]
        h1 = jnp.maximum(h1, 0.0)
        ffn = jnp.dot(h1, w2_ref[l], preferred_element_type=jnp.float32) + b2_ref[l]
        x = x + ffn

    # Encoder's final LayerNormalization; single output store.
    o_ref[...] = layer_norm(x, 4 * NUM_LAYERS)


# ------------------------------ wrapper ------------------------------ #

def encoder_forward(x, mask, layers, final_ln):
    """x: (B, S, D_MODEL) f32; mask: (B, S, S) 0/1 float; returns (B, S, D_MODEL)."""
    B, S, D = x.shape
    N = B * S

    # Pack per-layer weights into stacked arrays (single pallas_call arguments).
    w_qkv = jnp.stack([jnp.concatenate([lp["wq"], lp["wk"], lp["wv"]], axis=1)
                       for lp in layers])                     # (L, D, 3D)
    w_o = jnp.stack([lp["wo"] for lp in layers])              # (L, D, D)
    w1 = jnp.stack([lp["w1"] for lp in layers])               # (L, D, D_FF)
    b1 = jnp.stack([lp["b1"][None, :] for lp in layers])      # (L, 1, D_FF)
    w2 = jnp.stack([lp["w2"] for lp in layers])               # (L, D_FF, D)
    b2 = jnp.stack([lp["b2"][None, :] for lp in layers])      # (L, 1, D)
    ln = jnp.concatenate(
        [jnp.concatenate([lp["ln1"], lp["ln2"]]) for lp in layers] + [final_ln]
    ).astype(jnp.float32)                                     # (4L + 2,)

    # Additive attention bias over the flattened (B*S) rows:
    #   0      where same batch AND mask allows
    #   -1e30  otherwise (cross-batch entries or masked keys)
    same_batch = jnp.eye(B, dtype=jnp.float32)[:, None, :, None]        # (B,1,B,1)
    allowed = same_batch * mask[:, :, None, :].astype(jnp.float32)      # (B,S,B,S)
    attn_bias = jnp.where(allowed > 0, 0.0, NEG_INF).reshape(N, N).astype(jnp.float32)

    vmem = pl.BlockSpec(memory_space=pltpu.MemorySpace.VMEM)
    smem = pl.BlockSpec(memory_space=pltpu.MemorySpace.SMEM)

    out = pl.pallas_call(
        encoder_kernel,
        out_shape=jax.ShapeDtypeStruct((N, D), x.dtype),
        in_specs=[vmem, vmem, vmem, vmem, vmem, vmem, vmem, vmem, smem],
        out_specs=vmem,
    )(x.reshape(N, D).astype(jnp.float32), attn_bias,
      w_qkv, w_o, w1, b1, w2, b2, ln)
    return out.reshape(B, S, D)


# ------------------------------ pure-JAX reference ------------------------------ #

def ref_layernorm(x, alpha, beta):
    mean = jnp.mean(x, axis=-1, keepdims=True)
    std = jnp.std(x, axis=-1, ddof=1, keepdims=True)
    return alpha * (x - mean) / (std + EPS) + beta


def ref_mha(xn, mask, wq, wk, wv, wo):
    B, S, D = xn.shape
    q = (xn @ wq).reshape(B, S, N_HEADS, D_K).transpose(0, 2, 1, 3)
    k = (xn @ wk).reshape(B, S, N_HEADS, D_K).transpose(0, 2, 1, 3)
    v = (xn @ wv).reshape(B, S, N_HEADS, D_K).transpose(0, 2, 1, 3)
    s = jnp.einsum("bhqd,bhkd->bhqk", q, k) / math.sqrt(D_K)
    s = jnp.where(mask[:, None, :, :] > 0, s, NEG_INF)
    p = jax.nn.softmax(s, axis=-1)
    o = jnp.einsum("bhqk,bhkd->bhqd", p, v).transpose(0, 2, 1, 3).reshape(B, S, D)
    return o @ wo


def ref_encoder(x, mask, layers, final_ln):
    for lp in layers:
        xn = ref_layernorm(x, lp["ln1"][0], lp["ln1"][1])
        x = x + ref_mha(xn, mask, lp["wq"], lp["wk"], lp["wv"], lp["wo"])
        xn = ref_layernorm(x, lp["ln2"][0], lp["ln2"][1])
        h = jnp.maximum(xn @ lp["w1"] + lp["b1"], 0.0)
        x = x + (h @ lp["w2"] + lp["b2"])
    return ref_layernorm(x, final_ln[0], final_ln[1])


# ----------------------------------- main ----------------------------------- #

def make_params(key):
    def lin(k, fan_in, shape):
        return jax.random.normal(k, shape, jnp.float32) / math.sqrt(fan_in)

    layers = []
    for _ in range(NUM_LAYERS):
        key, *ks = jax.random.split(key, 12)
        layers.append(dict(
            # attention projections (bias=False in the module)
            wq=lin(ks[0], D_MODEL, (D_MODEL, D_MODEL)),
            wk=lin(ks[1], D_MODEL, (D_MODEL, D_MODEL)),
            wv=lin(ks[2], D_MODEL, (D_MODEL, D_MODEL)),
            wo=lin(ks[3], D_MODEL, (D_MODEL, D_MODEL)),
            # feed-forward
            w1=lin(ks[4], D_MODEL, (D_MODEL, D_FF)),
            b1=lin(ks[5], D_MODEL, (D_FF,)),
            w2=lin(ks[6], D_FF, (D_FF, D_MODEL)),
            b2=lin(ks[7], D_FF, (D_MODEL,)),
            # LayerNormalization scalar affine (init ones in the module; perturbed here)
            ln1=jnp.ones((2,), jnp.float32) + 0.1 * jax.random.normal(ks[8], (2,)),
            ln2=jnp.ones((2,), jnp.float32) + 0.1 * jax.random.normal(ks[9], (2,)),
        ))
    key, kf = jax.random.split(key)
    final_ln = jnp.ones((2,), jnp.float32) + 0.1 * jax.random.normal(kf, (2,))
    return layers, final_ln


if __name__ == "__main__":
    B, S = 2, 8
    key = jax.random.PRNGKey(0)
    key, kx = jax.random.split(key)

    x = jax.random.normal(kx, (B, S, D_MODEL), jnp.float32)

    # Padding-style source mask: batch 0 attends to all 8 keys, batch 1 to first 6.
    lengths = jnp.array([S, 6], jnp.int32)
    valid = (jnp.arange(S)[None, :] < lengths[:, None]).astype(jnp.float32)  # (B, S)
    mask = jnp.broadcast_to(valid[:, None, :], (B, S, S))                    # (B, S, S)

    layers, final_ln = make_params(key)

    run = jax.jit(encoder_forward)
    out = jax.block_until_ready(run(x, mask, layers, final_ln))

    ref = ref_encoder(x, mask, layers, final_ln)
    max_err = float(jnp.max(jnp.abs(out - ref)))
    assert max_err < 1e-2, f"mismatch vs reference: max |err| = {max_err}"

    print("KERNEL_OK")
</pallas_src>

<mosaic_0001>
module attributes {stable_mosaic.version = 11 : i64} {
  func.func @encoder_kernel(%arg0: memref<16x32xf32, #tpu.memory_space<vmem>>, %arg1: memref<16x16xf32, #tpu.memory_space<vmem>>, %arg2: memref<2x32x96xf32, #tpu.memory_space<vmem>>, %arg3: memref<2x32x32xf32, #tpu.memory_space<vmem>>, %arg4: memref<2x32x64xf32, #tpu.memory_space<vmem>>, %arg5: memref<2x1x64xf32, #tpu.memory_space<vmem>>, %arg6: memref<2x64x32xf32, #tpu.memory_space<vmem>>, %arg7: memref<2x1x32xf32, #tpu.memory_space<vmem>>, %arg8: memref<10xf32, #tpu.memory_space<smem>>, %arg9: memref<16x32xf32, #tpu.memory_space<vmem>>) attributes {dimension_semantics = [], scalar_prefetch = 0 : i64, scratch_operands = 0 : i64, tpu.core_type = #tpu.core_type<tc>} {
    %c0 = arith.constant 0 : index
    %c0_0 = arith.constant 0 : index
    %0 = vector.load %arg0[%c0, %c0_0] : memref<16x32xf32, #tpu.memory_space<vmem>>, vector<16x32xf32>
    %c0_1 = arith.constant 0 : index
    %c0_2 = arith.constant 0 : index
    %1 = vector.load %arg1[%c0_1, %c0_2] : memref<16x16xf32, #tpu.memory_space<vmem>>, vector<16x16xf32>
    %c0_3 = arith.constant 0 : index
    %2 = memref.load %arg8[%c0_3] : memref<10xf32, #tpu.memory_space<smem>>
    %c1 = arith.constant 1 : index
    %3 = memref.load %arg8[%c1] : memref<10xf32, #tpu.memory_space<smem>>
    %cst = arith.constant dense<0.000000e+00> : vector<16xf32>
    %4 = vector.multi_reduction <add>, %0, %cst [1] : vector<16x32xf32> to vector<16xf32>
    %5 = vector.shape_cast %4 : vector<16xf32> to vector<16x1xf32>
    %cst_4 = arith.constant 3.200000e+01 : f32
    %6 = vector.broadcast %cst_4 : f32 to vector<16x1xf32>
    %7 = arith.divf %5, %6 : vector<16x1xf32>
    %8 = vector.broadcast %7 : vector<16x1xf32> to vector<16x32xf32>
    %9 = arith.subf %0, %8 : vector<16x32xf32>
    %10 = arith.mulf %9, %9 : vector<16x32xf32>
    %cst_5 = arith.constant dense<0.000000e+00> : vector<16xf32>
    %11 = vector.multi_reduction <add>, %10, %cst_5 [1] : vector<16x32xf32> to vector<16xf32>
    %12 = vector.shape_cast %11 : vector<16xf32> to vector<16x1xf32>
    %cst_6 = arith.constant 0.0322580636 : f32
    %13 = vector.broadcast %cst_6 : f32 to vector<16x1xf32>
    %14 = arith.mulf %12, %13 : vector<16x1xf32>
    %15 = math.sqrt %14 : vector<16x1xf32>
    %cst_7 = arith.constant 9.99999974E-6 : f32
    %16 = vector.broadcast %cst_7 : f32 to vector<16x1xf32>
    %17 = arith.addf %15, %16 : vector<16x1xf32>
    %18 = tpu.reciprocal %17 {approx = true} : vector<16x1xf32> -> vector<16x1xf32>
    %19 = vector.broadcast %7 : vector<16x1xf32> to vector<16x32xf32>
    %20 = arith.subf %0, %19 : vector<16x32xf32>
    %21 = vector.broadcast %2 : f32 to vector<16x32xf32>
    %22 = arith.mulf %21, %20 : vector<16x32xf32>
    %23 = vector.broadcast %18 : vector<16x1xf32> to vector<16x32xf32>
    %24 = arith.mulf %22, %23 : vector<16x32xf32>
    %25 = vector.broadcast %3 : f32 to vector<16x32xf32>
    %26 = arith.addf %24, %25 : vector<16x32xf32>
    %c0_8 = arith.constant 0 : index
    %c0_9 = arith.constant 0 : index
    %c0_10 = arith.constant 0 : index
    %27 = vector.load %arg2[%c0_8, %c0_9, %c0_10] : memref<2x32x96xf32, #tpu.memory_space<vmem>>, vector<1x32x96xf32>
    %28 = vector.shape_cast %27 : vector<1x32x96xf32> to vector<32x96xf32>
    %c0_11 = arith.constant 0 : index
    %c0_12 = arith.constant 0 : index
    %c0_13 = arith.constant 0 : index
    %29 = vector.load %arg3[%c0_11, %c0_12, %c0_13] : memref<2x32x32xf32, #tpu.memory_space<vmem>>, vector<1x32x32xf32>
    %30 = vector.shape_cast %29 : vector<1x32x32xf32> to vector<32x32xf32>
    %cst_14 = arith.constant dense<0.000000e+00> : vector<16x96xf32>
    %31 = tpu.matmul %26, %28, %cst_14 {dimension_numbers = #tpu.dot_dimension_numbers<[1], [0], [0], [1], [0, 0, 1, 1], [], []>} : vector<16x32xf32>, vector<32x96xf32>, vector<16x96xf32> -> vector<16x96xf32>
    %cst_15 = arith.constant 0.000000e+00 : f32
    %32 = vector.broadcast %cst_15 : f32 to vector<16x32xf32>
    %33 = vector.extract_strided_slice %31 {offsets = [0, 0], sizes = [16, 8], strides = [1, 1]} : vector<16x96xf32> to vector<16x8xf32>
    %34 = vector.extract_strided_slice %31 {offsets = [0, 32], sizes = [16, 8], strides = [1, 1]} : vector<16x96xf32> to vector<16x8xf32>
    %35 = vector.extract_strided_slice %31 {offsets = [0, 64], sizes = [16, 8], strides = [1, 1]} : vector<16x96xf32> to vector<16x8xf32>
    %cst_16 = arith.constant dense<0.000000e+00> : vector<16x16xf32>
    %36 = tpu.matmul %33, %34, %cst_16 {dimension_numbers = #tpu.dot_dimension_numbers<[1], [1], [0], [0], [0, 0, 1, 0], [], []>} : vector<16x8xf32>, vector<16x8xf32>, vector<16x16xf32> -> vector<16x16xf32>
    %cst_17 = arith.constant 0.353553385 : f32
    %37 = vector.broadcast %cst_17 : f32 to vector<16x16xf32>
    %38 = arith.mulf %36, %37 : vector<16x16xf32>
    %39 = arith.addf %38, %1 : vector<16x16xf32>
    %cst_18 = arith.constant dense<0xFF800000> : vector<16xf32>
    %40 = vector.multi_reduction <maximumf>, %39, %cst_18 [1] : vector<16x16xf32> to vector<16xf32>
    %41 = vector.shape_cast %40 : vector<16xf32> to vector<16x1xf32>
    %42 = vector.broadcast %41 : vector<16x1xf32> to vector<16x16xf32>
    %43 = arith.subf %39, %42 : vector<16x16xf32>
    %44 = math.exp %43 : vector<16x16xf32>
    %cst_19 = arith.constant dense<0.000000e+00> : vector<16xf32>
    %45 = vector.multi_reduction <add>, %44, %cst_19 [1] : vector<16x16xf32> to vector<16xf32>
    %46 = vector.shape_cast %45 : vector<16xf32> to vector<16x1xf32>
    %47 = tpu.reciprocal %46 {approx = true} : vector<16x1xf32> -> vector<16x1xf32>
    %48 = vector.broadcast %47 : vector<16x1xf32> to vector<16x16xf32>
    %49 = arith.mulf %44, %48 : vector<16x16xf32>
    %cst_20 = arith.constant dense<0.000000e+00> : vector<16x8xf32>
    %50 = tpu.matmul %49, %35, %cst_20 {dimension_numbers = #tpu.dot_dimension_numbers<[1], [0], [0], [1], [0, 0, 1, 1], [], []>} : vector<16x16xf32>, vector<16x8xf32>, vector<16x8xf32> -> vector<16x8xf32>
    %51 = vector.extract_strided_slice %30 {offsets = [0, 0], sizes = [8, 32], strides = [1, 1]} : vector<32x32xf32> to vector<8x32xf32>
    %cst_21 = arith.constant dense<0.000000e+00> : vector<16x32xf32>
    %52 = tpu.matmul %50, %51, %cst_21 {dimension_numbers = #tpu.dot_dimension_numbers<[1], [0], [0], [1], [0, 0, 1, 1], [], []>} : vector<16x8xf32>, vector<8x32xf32>, vector<16x32xf32> -> vector<16x32xf32>
    %53 = arith.addf %32, %52 : vector<16x32xf32>
    %54 = vector.extract_strided_slice %31 {offsets = [0, 8], sizes = [16, 8], strides = [1, 1]} : vector<16x96xf32> to vector<16x8xf32>
    %55 = vector.extract_strided_slice %31 {offsets = [0, 40], sizes = [16, 8], strides = [1, 1]} : vector<16x96xf32> to vector<16x8xf32>
    %56 = vector.extract_strided_slice %31 {offsets = [0, 72], sizes = [16, 8], strides = [1, 1]} : vector<16x96xf32> to vector<16x8xf32>
    %cst_22 = arith.constant dense<0.000000e+00> : vector<16x16xf32>
    %57 = tpu.matmul %54, %55, %cst_22 {dimension_numbers = #tpu.dot_dimension_numbers<[1], [1], [0], [0], [0, 0, 1, 0], [], []>} : vector<16x8xf32>, vector<16x8xf32>, vector<16x16xf32> -> vector<16x16xf32>
    %cst_23 = arith.constant 0.353553385 : f32
    %58 = vector.broadcast %cst_23 : f32 to vector<16x16xf32>
    %59 = arith.mulf %57, %58 : vector<16x16xf32>
    %60 = arith.addf %59, %1 : vector<16x16xf32>
    %cst_24 = arith.constant dense<0xFF800000> : vector<16xf32>
    %61 = vector.multi_reduction <maximumf>, %60, %cst_24 [1] : vector<16x16xf32> to vector<16xf32>
    %62 = vector.shape_cast %61 : vector<16xf32> to vector<16x1xf32>
    %63 = vector.broadcast %62 : vector<16x1xf32> to vector<16x16xf32>
    %64 = arith.subf %60, %63 : vector<16x16xf32>
    %65 = math.exp %64 : vector<16x16xf32>
    %cst_25 = arith.constant dense<0.000000e+00> : vector<16xf32>
    %66 = vector.multi_reduction <add>, %65, %cst_25 [1] : vector<16x16xf32> to vector<16xf32>
    %67 = vector.shape_cast %66 : vector<16xf32> to vector<16x1xf32>
    %68 = tpu.reciprocal %67 {approx = true} : vector<16x1xf32> -> vector<16x1xf32>
    %69 = vector.broadcast %68 : vector<16x1xf32> to vector<16x16xf32>
    %70 = arith.mulf %65, %69 : vector<16x16xf32>
    %cst_26 = arith.constant dense<0.000000e+00> : vector<16x8xf32>
    %71 = tpu.matmul %70, %56, %cst_26 {dimension_numbers = #tpu.dot_dimension_numbers<[1], [0], [0], [1], [0, 0, 1, 1], [], []>} : vector<16x16xf32>, vector<16x8xf32>, vector<16x8xf32> -> vector<16x8xf32>
    %72 = vector.extract_strided_slice %30 {offsets = [8, 0], sizes = [8, 32], strides = [1, 1]} : vector<32x32xf32> to vector<8x32xf32>
    %cst_27 = arith.constant dense<0.000000e+00> : vector<16x32xf32>
    %73 = tpu.matmul %71, %72, %cst_27 {dimension_numbers = #tpu.dot_dimension_numbers<[1], [0], [0], [1], [0, 0, 1, 1], [], []>} : vector<16x8xf32>, vector<8x32xf32>, vector<16x32xf32> -> vector<16x32xf32>
    %74 = arith.addf %53, %73 : vector<16x32xf32>
    %75 = vector.extract_strided_slice %31 {offsets = [0, 16], sizes = [16, 8], strides = [1, 1]} : vector<16x96xf32> to vector<16x8xf32>
    %76 = vector.extract_strided_slice %31 {offsets = [0, 48], sizes = [16, 8], strides = [1, 1]} : vector<16x96xf32> to vector<16x8xf32>
    %77 = vector.extract_strided_slice %31 {offsets = [0, 80], sizes = [16, 8], strides = [1, 1]} : vector<16x96xf32> to vector<16x8xf32>
    %cst_28 = arith.constant dense<0.000000e+00> : vector<16x16xf32>
    %78 = tpu.matmul %75, %76, %cst_28 {dimension_numbers = #tpu.dot_dimension_numbers<[1], [1], [0], [0], [0, 0, 1, 0], [], []>} : vector<16x8xf32>, vector<16x8xf32>, vector<16x16xf32> -> vector<16x16xf32>
    %cst_29 = arith.constant 0.353553385 : f32
    %79 = vector.broadcast %cst_29 : f32 to vector<16x16xf32>
    %80 = arith.mulf %78, %79 : vector<16x16xf32>
    %81 = arith.addf %80, %1 : vector<16x16xf32>
    %cst_30 = arith.constant dense<0xFF800000> : vector<16xf32>
    %82 = vector.multi_reduction <maximumf>, %81, %cst_30 [1] : vector<16x16xf32> to vector<16xf32>
    %83 = vector.shape_cast %82 : vector<16xf32> to vector<16x1xf32>
    %84 = vector.broadcast %83 : vector<16x1xf32> to vector<16x16xf32>
    %85 = arith.subf %81, %84 : vector<16x16xf32>
    %86 = math.exp %85 : vector<16x16xf32>
    %cst_31 = arith.constant dense<0.000000e+00> : vector<16xf32>
    %87 = vector.multi_reduction <add>, %86, %cst_31 [1] : vector<16x16xf32> to vector<16xf32>
    %88 = vector.shape_cast %87 : vector<16xf32> to vector<16x1xf32>
    %89 = tpu.reciprocal %88 {approx = true} : vector<16x1xf32> -> vector<16x1xf32>
    %90 = vector.broadcast %89 : vector<16x1xf32> to vector<16x16xf32>
    %91 = arith.mulf %86, %90 : vector<16x16xf32>
    %cst_32 = arith.constant dense<0.000000e+00> : vector<16x8xf32>
    %92 = tpu.matmul %91, %77, %cst_32 {dimension_numbers = #tpu.dot_dimension_numbers<[1], [0], [0], [1], [0, 0, 1, 1], [], []>} : vector<16x16xf32>, vector<16x8xf32>, vector<16x8xf32> -> vector<16x8xf32>
    %93 = vector.extract_strided_slice %30 {offsets = [16, 0], sizes = [8, 32], strides = [1, 1]} : vector<32x32xf32> to vector<8x32xf32>
    %cst_33 = arith.constant dense<0.000000e+00> : vector<16x32xf32>
    %94 = tpu.matmul %92, %93, %cst_33 {dimension_numbers = #tpu.dot_dimension_numbers<[1], [0], [0], [1], [0, 0, 1, 1], [], []>} : vector<16x8xf32>, vector<8x32xf32>, vector<16x32xf32> -> vector<16x32xf32>
    %95 = arith.addf %74, %94 : vector<16x32xf32>
    %96 = vector.extract_strided_slice %31 {offsets = [0, 24], sizes = [16, 8], strides = [1, 1]} : vector<16x96xf32> to vector<16x8xf32>
    %97 = vector.extract_strided_slice %31 {offsets = [0, 56], sizes = [16, 8], strides = [1, 1]} : vector<16x96xf32> to vector<16x8xf32>
    %98 = vector.extract_strided_slice %31 {offsets = [0, 88], sizes = [16, 8], strides = [1, 1]} : vector<16x96xf32> to vector<16x8xf32>
    %cst_34 = arith.constant dense<0.000000e+00> : vector<16x16xf32>
    %99 = tpu.matmul %96, %97, %cst_34 {dimension_numbers = #tpu.dot_dimension_numbers<[1], [1], [0], [0], [0, 0, 1, 0], [], []>} : vector<16x8xf32>, vector<16x8xf32>, vector<16x16xf32> -> vector<16x16xf32>
    %cst_35 = arith.constant 0.353553385 : f32
    %100 = vector.broadcast %cst_35 : f32 to vector<16x16xf32>
    %101 = arith.mulf %99, %100 : vector<16x16xf32>
    %102 = arith.addf %101, %1 : vector<16x16xf32>
    %cst_36 = arith.constant dense<0xFF800000> : vector<16xf32>
    %103 = vector.multi_reduction <maximumf>, %102, %cst_36 [1] : vector<16x16xf32> to vector<16xf32>
    %104 = vector.shape_cast %103 : vector<16xf32> to vector<16x1xf32>
    %105 = vector.broadcast %104 : vector<16x1xf32> to vector<16x16xf32>
    %106 = arith.subf %102, %105 : vector<16x16xf32>
    %107 = math.exp %106 : vector<16x16xf32>
    %cst_37 = arith.constant dense<0.000000e+00> : vector<16xf32>
    %108 = vector.multi_reduction <add>, %107, %cst_37 [1] : vector<16x16xf32> to vector<16xf32>
    %109 = vector.shape_cast %108 : vector<16xf32> to vector<16x1xf32>
    %110 = tpu.reciprocal %109 {approx = true} : vector<16x1xf32> -> vector<16x1xf32>
    %111 = vector.broadcast %110 : vector<16x1xf32> to vector<16x16xf32>
    %112 = arith.mulf %107, %111 : vector<16x16xf32>
    %cst_38 = arith.constant dense<0.000000e+00> : vector<16x8xf32>
    %113 = tpu.matmul %112, %98, %cst_38 {dimension_numbers = #tpu.dot_dimension_numbers<[1], [0], [0], [1], [0, 0, 1, 1], [], []>} : vector<16x16xf32>, vector<16x8xf32>, vector<16x8xf32> -> vector<16x8xf32>
    %114 = vector.extract_strided_slice %30 {offsets = [24, 0], sizes = [8, 32], strides = [1, 1]} : vector<32x32xf32> to vector<8x32xf32>
    %cst_39 = arith.constant dense<0.000000e+00> : vector<16x32xf32>
    %115 = tpu.matmul %113, %114, %cst_39 {dimension_numbers = #tpu.dot_dimension_numbers<[1], [0], [0], [1], [0, 0, 1, 1], [], []>} : vector<16x8xf32>, vector<8x32xf32>, vector<16x32xf32> -> vector<16x32xf32>
    %116 = arith.addf %95, %115 : vector<16x32xf32>
    %117 = arith.addf %0, %116 : vector<16x32xf32>
    %c2 = arith.constant 2 : index
    %118 = memref.load %arg8[%c2] : memref<10xf32, #tpu.memory_space<smem>>
    %c3 = arith.constant 3 : index
    %119 = memref.load %arg8[%c3] : memref<10xf32, #tpu.memory_space<smem>>
    %cst_40 = arith.constant dense<0.000000e+00> : vector<16xf32>
    %120 = vector.multi_reduction <add>, %117, %cst_40 [1] : vector<16x32xf32> to vector<16xf32>
    %121 = vector.shape_cast %120 : vector<16xf32> to vector<16x1xf32>
    %cst_41 = arith.constant 3.200000e+01 : f32
    %122 = vector.broadcast %cst_41 : f32 to vector<16x1xf32>
    %123 = arith.divf %121, %122 : vector<16x1xf32>
    %124 = vector.broadcast %123 : vector<16x1xf32> to vector<16x32xf32>
    %125 = arith.subf %117, %124 : vector<16x32xf32>
    %126 = arith.mulf %125, %125 : vector<16x32xf32>
    %cst_42 = arith.constant dense<0.000000e+00> : vector<16xf32>
    %127 = vector.multi_reduction <add>, %126, %cst_42 [1] : vector<16x32xf32> to vector<16xf32>
    %128 = vector.shape_cast %127 : vector<16xf32> to vector<16x1xf32>
    %cst_43 = arith.constant 0.0322580636 : f32
    %129 = vector.broadcast %cst_43 : f32 to vector<16x1xf32>
    %130 = arith.mulf %128, %129 : vector<16x1xf32>
    %131 = math.sqrt %130 : vector<16x1xf32>
    %cst_44 = arith.constant 9.99999974E-6 : f32
    %132 = vector.broadcast %cst_44 : f32 to vector<16x1xf32>
    %133 = arith.addf %131, %132 : vector<16x1xf32>
    %134 = tpu.reciprocal %133 {approx = true} : vector<16x1xf32> -> vector<16x1xf32>
    %135 = vector.broadcast %123 : vector<16x1xf32> to vector<16x32xf32>
    %136 = arith.subf %117, %135 : vector<16x32xf32>
    %137 = vector.broadcast %118 : f32 to vector<16x32xf32>
    %138 = arith.mulf %137, %136 : vector<16x32xf32>
    %139 = vector.broadcast %134 : vector<16x1xf32> to vector<16x32xf32>
    %140 = arith.mulf %138, %139 : vector<16x32xf32>
    %141 = vector.broadcast %119 : f32 to vector<16x32xf32>
    %142 = arith.addf %140, %141 : vector<16x32xf32>
    %c0_45 = arith.constant 0 : index
    %c0_46 = arith.constant 0 : index
    %c0_47 = arith.constant 0 : index
    %143 = vector.load %arg4[%c0_45, %c0_46, %c0_47] : memref<2x32x64xf32, #tpu.memory_space<vmem>>, vector<1x32x64xf32>
    %144 = vector.shape_cast %143 : vector<1x32x64xf32> to vector<32x64xf32>
    %cst_48 = arith.constant dense<0.000000e+00> : vector<16x64xf32>
    %145 = tpu.matmul %142, %144, %cst_48 {dimension_numbers = #tpu.dot_dimension_numbers<[1], [0], [0], [1], [0, 0, 1, 1], [], []>} : vector<16x32xf32>, vector<32x64xf32>, vector<16x64xf32> -> vector<16x64xf32>
    %c0_49 = arith.constant 0 : index
    %c0_50 = arith.constant 0 : index
    %c0_51 = arith.constant 0 : index
    %146 = vector.load %arg5[%c0_49, %c0_50, %c0_51] : memref<2x1x64xf32, #tpu.memory_space<vmem>>, vector<1x1x64xf32>
    %147 = vector.shape_cast %146 : vector<1x1x64xf32> to vector<1x64xf32>
    %148 = vector.broadcast %147 : vector<1x64xf32> to vector<16x64xf32>
    %149 = arith.addf %145, %148 : vector<16x64xf32>
    %cst_52 = arith.constant 0.000000e+00 : f32
    %150 = vector.broadcast %cst_52 : f32 to vector<16x64xf32>
    %151 = arith.maximumf %149, %150 : vector<16x64xf32>
    %c0_53 = arith.constant 0 : index
    %c0_54 = arith.constant 0 : index
    %c0_55 = arith.constant 0 : index
    %152 = vector.load %arg6[%c0_53, %c0_54, %c0_55] : memref<2x64x32xf32, #tpu.memory_space<vmem>>, vector<1x64x32xf32>
    %153 = vector.shape_cast %152 : vector<1x64x32xf32> to vector<64x32xf32>
    %cst_56 = arith.constant dense<0.000000e+00> : vector<16x32xf32>
    %154 = tpu.matmul %151, %153, %cst_56 {dimension_numbers = #tpu.dot_dimension_numbers<[1], [0], [0], [1], [0, 0, 1, 1], [], []>} : vector<16x64xf32>, vector<64x32xf32>, vector<16x32xf32> -> vector<16x32xf32>
    %c0_57 = arith.constant 0 : index
    %c0_58 = arith.constant 0 : index
    %c0_59 = arith.constant 0 : index
    %155 = vector.load %arg7[%c0_57, %c0_58, %c0_59] : memref<2x1x32xf32, #tpu.memory_space<vmem>>, vector<1x1x32xf32>
    %156 = vector.shape_cast %155 : vector<1x1x32xf32> to vector<1x32xf32>
    %157 = vector.broadcast %156 : vector<1x32xf32> to vector<16x32xf32>
    %158 = arith.addf %154, %157 : vector<16x32xf32>
    %159 = arith.addf %117, %158 : vector<16x32xf32>
    %c4 = arith.constant 4 : index
    %160 = memref.load %arg8[%c4] : memref<10xf32, #tpu.memory_space<smem>>
    %c5 = arith.constant 5 : index
    %161 = memref.load %arg8[%c5] : memref<10xf32, #tpu.memory_space<smem>>
    %cst_60 = arith.constant dense<0.000000e+00> : vector<16xf32>
    %162 = vector.multi_reduction <add>, %159, %cst_60 [1] : vector<16x32xf32> to vector<16xf32>
    %163 = vector.shape_cast %162 : vector<16xf32> to vector<16x1xf32>
    %cst_61 = arith.constant 3.200000e+01 : f32
    %164 = vector.broadcast %cst_61 : f32 to vector<16x1xf32>
    %165 = arith.divf %163, %164 : vector<16x1xf32>
    %166 = vector.broadcast %165 : vector<16x1xf32> to vector<16x32xf32>
    %167 = arith.subf %159, %166 : vector<16x32xf32>
    %168 = arith.mulf %167, %167 : vector<16x32xf32>
    %cst_62 = arith.constant dense<0.000000e+00> : vector<16xf32>
    %169 = vector.multi_reduction <add>, %168, %cst_62 [1] : vector<16x32xf32> to vector<16xf32>
    %170 = vector.shape_cast %169 : vector<16xf32> to vector<16x1xf32>
    %cst_63 = arith.constant 0.0322580636 : f32
    %171 = vector.broadcast %cst_63 : f32 to vector<16x1xf32>
    %172 = arith.mulf %170, %171 : vector<16x1xf32>
    %173 = math.sqrt %172 : vector<16x1xf32>
    %cst_64 = arith.constant 9.99999974E-6 : f32
    %174 = vector.broadcast %cst_64 : f32 to vector<16x1xf32>
    %175 = arith.addf %173, %174 : vector<16x1xf32>
    %176 = tpu.reciprocal %175 {approx = true} : vector<16x1xf32> -> vector<16x1xf32>
    %177 = vector.broadcast %165 : vector<16x1xf32> to vector<16x32xf32>
    %178 = arith.subf %159, %177 : vector<16x32xf32>
    %179 = vector.broadcast %160 : f32 to vector<16x32xf32>
    %180 = arith.mulf %179, %178 : vector<16x32xf32>
    %181 = vector.broadcast %176 : vector<16x1xf32> to vector<16x32xf32>
    %182 = arith.mulf %180, %181 : vector<16x32xf32>
    %183 = vector.broadcast %161 : f32 to vector<16x32xf32>
    %184 = arith.addf %182, %183 : vector<16x32xf32>
    %c1_65 = arith.constant 1 : index
    %c0_66 = arith.constant 0 : index
    %c0_67 = arith.constant 0 : index
    %185 = vector.load %arg2[%c1_65, %c0_66, %c0_67] : memref<2x32x96xf32, #tpu.memory_space<vmem>>, vector<1x32x96xf32>
    %186 = vector.shape_cast %185 : vector<1x32x96xf32> to vector<32x96xf32>
    %c1_68 = arith.constant 1 : index
    %c0_69 = arith.constant 0 : index
    %c0_70 = arith.constant 0 : index
    %187 = vector.load %arg3[%c1_68, %c0_69, %c0_70] : memref<2x32x32xf32, #tpu.memory_space<vmem>>, vector<1x32x32xf32>
    %188 = vector.shape_cast %187 : vector<1x32x32xf32> to vector<32x32xf32>
    %cst_71 = arith.constant dense<0.000000e+00> : vector<16x96xf32>
    %189 = tpu.matmul %184, %186, %cst_71 {dimension_numbers = #tpu.dot_dimension_numbers<[1], [0], [0], [1], [0, 0, 1, 1], [], []>} : vector<16x32xf32>, vector<32x96xf32>, vector<16x96xf32> -> vector<16x96xf32>
    %cst_72 = arith.constant 0.000000e+00 : f32
    %190 = vector.broadcast %cst_72 : f32 to vector<16x32xf32>
    %191 = vector.extract_strided_slice %189 {offsets = [0, 0], sizes = [16, 8], strides = [1, 1]} : vector<16x96xf32> to vector<16x8xf32>
    %192 = vector.extract_strided_slice %189 {offsets = [0, 32], sizes = [16, 8], strides = [1, 1]} : vector<16x96xf32> to vector<16x8xf32>
    %193 = vector.extract_strided_slice %189 {offsets = [0, 64], sizes = [16, 8], strides = [1, 1]} : vector<16x96xf32> to vector<16x8xf32>
    %cst_73 = arith.constant dense<0.000000e+00> : vector<16x16xf32>
    %194 = tpu.matmul %191, %192, %cst_73 {dimension_numbers = #tpu.dot_dimension_numbers<[1], [1], [0], [0], [0, 0, 1, 0], [], []>} : vector<16x8xf32>, vector<16x8xf32>, vector<16x16xf32> -> vector<16x16xf32>
    %cst_74 = arith.constant 0.353553385 : f32
    %195 = vector.broadcast %cst_74 : f32 to vector<16x16xf32>
    %196 = arith.mulf %194, %195 : vector<16x16xf32>
    %197 = arith.addf %196, %1 : vector<16x16xf32>
    %cst_75 = arith.constant dense<0xFF800000> : vector<16xf32>
    %198 = vector.multi_reduction <maximumf>, %197, %cst_75 [1] : vector<16x16xf32> to vector<16xf32>
    %199 = vector.shape_cast %198 : vector<16xf32> to vector<16x1xf32>
    %200 = vector.broadcast %199 : vector<16x1xf32> to vector<16x16xf32>
    %201 = arith.subf %197, %200 : vector<16x16xf32>
    %202 = math.exp %201 : vector<16x16xf32>
    %cst_76 = arith.constant dense<0.000000e+00> : vector<16xf32>
    %203 = vector.multi_reduction <add>, %202, %cst_76 [1] : vector<16x16xf32> to vector<16xf32>
    %204 = vector.shape_cast %203 : vector<16xf32> to vector<16x1xf32>
    %205 = tpu.reciprocal %204 {approx = true} : vector<16x1xf32> -> vector<16x1xf32>
    %206 = vector.broadcast %205 : vector<16x1xf32> to vector<16x16xf32>
    %207 = arith.mulf %202, %206 : vector<16x16xf32>
    %cst_77 = arith.constant dense<0.000000e+00> : vector<16x8xf32>
    %208 = tpu.matmul %207, %193, %cst_77 {dimension_numbers = #tpu.dot_dimension_numbers<[1], [0], [0], [1], [0, 0, 1, 1], [], []>} : vector<16x16xf32>, vector<16x8xf32>, vector<16x8xf32> -> vector<16x8xf32>
    %209 = vector.extract_strided_slice %188 {offsets = [0, 0], sizes = [8, 32], strides = [1, 1]} : vector<32x32xf32> to vector<8x32xf32>
    %cst_78 = arith.constant dense<0.000000e+00> : vector<16x32xf32>
    %210 = tpu.matmul %208, %209, %cst_78 {dimension_numbers = #tpu.dot_dimension_numbers<[1], [0], [0], [1], [0, 0, 1, 1], [], []>} : vector<16x8xf32>, vector<8x32xf32>, vector<16x32xf32> -> vector<16x32xf32>
    %211 = arith.addf %190, %210 : vector<16x32xf32>
    %212 = vector.extract_strided_slice %189 {offsets = [0, 8], sizes = [16, 8], strides = [1, 1]} : vector<16x96xf32> to vector<16x8xf32>
    %213 = vector.extract_strided_slice %189 {offsets = [0, 40], sizes = [16, 8], strides = [1, 1]} : vector<16x96xf32> to vector<16x8xf32>
    %214 = vector.extract_strided_slice %189 {offsets = [0, 72], sizes = [16, 8], strides = [1, 1]} : vector<16x96xf32> to vector<16x8xf32>
    %cst_79 = arith.constant dense<0.000000e+00> : vector<16x16xf32>
    %215 = tpu.matmul %212, %213, %cst_79 {dimension_numbers = #tpu.dot_dimension_numbers<[1], [1], [0], [0], [0, 0, 1, 0], [], []>} : vector<16x8xf32>, vector<16x8xf32>, vector<16x16xf32> -> vector<16x16xf32>
    %cst_80 = arith.constant 0.353553385 : f32
    %216 = vector.broadcast %cst_80 : f32 to vector<16x16xf32>
    %217 = arith.mulf %215, %216 : vector<16x16xf32>
    %218 = arith.addf %217, %1 : vector<16x16xf32>
    %cst_81 = arith.constant dense<0xFF800000> : vector<16xf32>
    %219 = vector.multi_reduction <maximumf>, %218, %cst_81 [1] : vector<16x16xf32> to vector<16xf32>
    %220 = vector.shape_cast %219 : vector<16xf32> to vector<16x1xf32>
    %221 = vector.broadcast %220 : vector<16x1xf32> to vector<16x16xf32>
    %222 = arith.subf %218, %221 : vector<16x16xf32>
    %223 = math.exp %222 : vector<16x16xf32>
    %cst_82 = arith.constant dense<0.000000e+00> : vector<16xf32>
    %224 = vector.multi_reduction <add>, %223, %cst_82 [1] : vector<16x16xf32> to vector<16xf32>
    %225 = vector.shape_cast %224 : vector<16xf32> to vector<16x1xf32>
    %226 = tpu.reciprocal %225 {approx = true} : vector<16x1xf32> -> vector<16x1xf32>
    %227 = vector.broadcast %226 : vector<16x1xf32> to vector<16x16xf32>
    %228 = arith.mulf %223, %227 : vector<16x16xf32>
    %cst_83 = arith.constant dense<0.000000e+00> : vector<16x8xf32>
    %229 = tpu.matmul %228, %214, %cst_83 {dimension_numbers = #tpu.dot_dimension_numbers<[1], [0], [0], [1], [0, 0, 1, 1], [], []>} : vector<16x16xf32>, vector<16x8xf32>, vector<16x8xf32> -> vector<16x8xf32>
    %230 = vector.extract_strided_slice %188 {offsets = [8, 0], sizes = [8, 32], strides = [1, 1]} : vector<32x32xf32> to vector<8x32xf32>
    %cst_84 = arith.constant dense<0.000000e+00> : vector<16x32xf32>
    %231 = tpu.matmul %229, %230, %cst_84 {dimension_numbers = #tpu.dot_dimension_numbers<[1], [0], [0], [1], [0, 0, 1, 1], [], []>} : vector<16x8xf32>, vector<8x32xf32>, vector<16x32xf32> -> vector<16x32xf32>
    %232 = arith.addf %211, %231 : vector<16x32xf32>
    %233 = vector.extract_strided_slice %189 {offsets = [0, 16], sizes = [16, 8], strides = [1, 1]} : vector<16x96xf32> to vector<16x8xf32>
    %234 = vector.extract_strided_slice %189 {offsets = [0, 48], sizes = [16, 8], strides = [1, 1]} : vector<16x96xf32> to vector<16x8xf32>
    %235 = vector.extract_strided_slice %189 {offsets = [0, 80], sizes = [16, 8], strides = [1, 1]} : vector<16x96xf32> to vector<16x8xf32>
    %cst_85 = arith.constant dense<0.000000e+00> : vector<16x16xf32>
    %236 = tpu.matmul %233, %234, %cst_85 {dimension_numbers = #tpu.dot_dimension_numbers<[1], [1], [0], [0], [0, 0, 1, 0], [], []>} : vector<16x8xf32>, vector<16x8xf32>, vector<16x16xf32> -> vector<16x16xf32>
    %cst_86 = arith.constant 0.353553385 : f32
    %237 = vector.broadcast %cst_86 : f32 to vector<16x16xf32>
    %238 = arith.mulf %236, %237 : vector<16x16xf32>
    %239 = arith.addf %238, %1 : vector<16x16xf32>
    %cst_87 = arith.constant dense<0xFF800000> : vector<16xf32>
    %240 = vector.multi_reduction <maximumf>, %239, %cst_87 [1] : vector<16x16xf32> to vector<16xf32>
    %241 = vector.shape_cast %240 : vector<16xf32> to vector<16x1xf32>
    %242 = vector.broadcast %241 : vector<16x1xf32> to vector<16x16xf32>
    %243 = arith.subf %239, %242 : vector<16x16xf32>
    %244 = math.exp %243 : vector<16x16xf32>
    %cst_88 = arith.constant dense<0.000000e+00> : vector<16xf32>
    %245 = vector.multi_reduction <add>, %244, %cst_88 [1] : vector<16x16xf32> to vector<16xf32>
    %246 = vector.shape_cast %245 : vector<16xf32> to vector<16x1xf32>
    %247 = tpu.reciprocal %246 {approx = true} : vector<16x1xf32> -> vector<16x1xf32>
    %248 = vector.broadcast %247 : vector<16x1xf32> to vector<16x16xf32>
    %249 = arith.mulf %244, %248 : vector<16x16xf32>
    %cst_89 = arith.constant dense<0.000000e+00> : vector<16x8xf32>
    %250 = tpu.matmul %249, %235, %cst_89 {dimension_numbers = #tpu.dot_dimension_numbers<[1], [0], [0], [1], [0, 0, 1, 1], [], []>} : vector<16x16xf32>, vector<16x8xf32>, vector<16x8xf32> -> vector<16x8xf32>
    %251 = vector.extract_strided_slice %188 {offsets = [16, 0], sizes = [8, 32], strides = [1, 1]} : vector<32x32xf32> to vector<8x32xf32>
    %cst_90 = arith.constant dense<0.000000e+00> : vector<16x32xf32>
    %252 = tpu.matmul %250, %251, %cst_90 {dimension_numbers = #tpu.dot_dimension_numbers<[1], [0], [0], [1], [0, 0, 1, 1], [], []>} : vector<16x8xf32>, vector<8x32xf32>, vector<16x32xf32> -> vector<16x32xf32>
    %253 = arith.addf %232, %252 : vector<16x32xf32>
    %254 = vector.extract_strided_slice %189 {offsets = [0, 24], sizes = [16, 8], strides = [1, 1]} : vector<16x96xf32> to vector<16x8xf32>
    %255 = vector.extract_strided_slice %189 {offsets = [0, 56], sizes = [16, 8], strides = [1, 1]} : vector<16x96xf32> to vector<16x8xf32>
    %256 = vector.extract_strided_slice %189 {offsets = [0, 88], sizes = [16, 8], strides = [1, 1]} : vector<16x96xf32> to vector<16x8xf32>
    %cst_91 = arith.constant dense<0.000000e+00> : vector<16x16xf32>
    %257 = tpu.matmul %254, %255, %cst_91 {dimension_numbers = #tpu.dot_dimension_numbers<[1], [1], [0], [0], [0, 0, 1, 0], [], []>} : vector<16x8xf32>, vector<16x8xf32>, vector<16x16xf32> -> vector<16x16xf32>
    %cst_92 = arith.constant 0.353553385 : f32
    %258 = vector.broadcast %cst_92 : f32 to vector<16x16xf32>
    %259 = arith.mulf %257, %258 : vector<16x16xf32>
    %260 = arith.addf %259, %1 : vector<16x16xf32>
    %cst_93 = arith.constant dense<0xFF800000> : vector<16xf32>
    %261 = vector.multi_reduction <maximumf>, %260, %cst_93 [1] : vector<16x16xf32> to vector<16xf32>
    %262 = vector.shape_cast %261 : vector<16xf32> to vector<16x1xf32>
    %263 = vector.broadcast %262 : vector<16x1xf32> to vector<16x16xf32>
    %264 = arith.subf %260, %263 : vector<16x16xf32>
    %265 = math.exp %264 : vector<16x16xf32>
    %cst_94 = arith.constant dense<0.000000e+00> : vector<16xf32>
    %266 = vector.multi_reduction <add>, %265, %cst_94 [1] : vector<16x16xf32> to vector<16xf32>
    %267 = vector.shape_cast %266 : vector<16xf32> to vector<16x1xf32>
    %268 = tpu.reciprocal %267 {approx = true} : vector<16x1xf32> -> vector<16x1xf32>
    %269 = vector.broadcast %268 : vector<16x1xf32> to vector<16x16xf32>
    %270 = arith.mulf %265, %269 : vector<16x16xf32>
    %cst_95 = arith.constant dense<0.000000e+00> : vector<16x8xf32>
    %271 = tpu.matmul %270, %256, %cst_95 {dimension_numbers = #tpu.dot_dimension_numbers<[1], [0], [0], [1], [0, 0, 1, 1], [], []>} : vector<16x16xf32>, vector<16x8xf32>, vector<16x8xf32> -> vector<16x8xf32>
    %272 = vector.extract_strided_slice %188 {offsets = [24, 0], sizes = [8, 32], strides = [1, 1]} : vector<32x32xf32> to vector<8x32xf32>
    %cst_96 = arith.constant dense<0.000000e+00> : vector<16x32xf32>
    %273 = tpu.matmul %271, %272, %cst_96 {dimension_numbers = #tpu.dot_dimension_numbers<[1], [0], [0], [1], [0, 0, 1, 1], [], []>} : vector<16x8xf32>, vector<8x32xf32>, vector<16x32xf32> -> vector<16x32xf32>
    %274 = arith.addf %253, %273 : vector<16x32xf32>
    %275 = arith.addf %159, %274 : vector<16x32xf32>
    %c6 = arith.constant 6 : index
    %276 = memref.load %arg8[%c6] : memref<10xf32, #tpu.memory_space<smem>>
    %c7 = arith.constant 7 : index
    %277 = memref.load %arg8[%c7] : memref<10xf32, #tpu.memory_space<smem>>
    %cst_97 = arith.constant dense<0.000000e+00> : vector<16xf32>
    %278 = vector.multi_reduction <add>, %275, %cst_97 [1] : vector<16x32xf32> to vector<16xf32>
    %279 = vector.shape_cast %278 : vector<16xf32> to vector<16x1xf32>
    %cst_98 = arith.constant 3.200000e+01 : f32
    %280 = vector.broadcast %cst_98 : f32 to vector<16x1xf32>
    %281 = arith.divf %279, %280 : vector<16x1xf32>
    %282 = vector.broadcast %281 : vector<16x1xf32> to vector<16x32xf32>
    %283 = arith.subf %275, %282 : vector<16x32xf32>
    %284 = arith.mulf %283, %283 : vector<16x32xf32>
    %cst_99 = arith.constant dense<0.000000e+00> : vector<16xf32>
    %285 = vector.multi_reduction <add>, %284, %cst_99 [1] : vector<16x32xf32> to vector<16xf32>
    %286 = vector.shape_cast %285 : vector<16xf32> to vector<16x1xf32>
    %cst_100 = arith.constant 0.0322580636 : f32
    %287 = vector.broadcast %cst_100 : f32 to vector<16x1xf32>
    %288 = arith.mulf %286, %287 : vector<16x1xf32>
    %289 = math.sqrt %288 : vector<16x1xf32>
    %cst_101 = arith.constant 9.99999974E-6 : f32
    %290 = vector.broadcast %cst_101 : f32 to vector<16x1xf32>
    %291 = arith.addf %289, %290 : vector<16x1xf32>
    %292 = tpu.reciprocal %291 {approx = true} : vector<16x1xf32> -> vector<16x1xf32>
    %293 = vector.broadcast %281 : vector<16x1xf32> to vector<16x32xf32>
    %294 = arith.subf %275, %293 : vector<16x32xf32>
    %295 = vector.broadcast %276 : f32 to vector<16x32xf32>
    %296 = arith.mulf %295, %294 : vector<16x32xf32>
    %297 = vector.broadcast %292 : vector<16x1xf32> to vector<16x32xf32>
    %298 = arith.mulf %296, %297 : vector<16x32xf32>
    %299 = vector.broadcast %277 : f32 to vector<16x32xf32>
    %300 = arith.addf %298, %299 : vector<16x32xf32>
    %c1_102 = arith.constant 1 : index
    %c0_103 = arith.constant 0 : index
    %c0_104 = arith.constant 0 : index
    %301 = vector.load %arg4[%c1_102, %c0_103, %c0_104] : memref<2x32x64xf32, #tpu.memory_space<vmem>>, vector<1x32x64xf32>
    %302 = vector.shape_cast %301 : vector<1x32x64xf32> to vector<32x64xf32>
    %cst_105 = arith.constant dense<0.000000e+00> : vector<16x64xf32>
    %303 = tpu.matmul %300, %302, %cst_105 {dimension_numbers = #tpu.dot_dimension_numbers<[1], [0], [0], [1], [0, 0, 1, 1], [], []>} : vector<16x32xf32>, vector<32x64xf32>, vector<16x64xf32> -> vector<16x64xf32>
    %c1_106 = arith.constant 1 : index
    %c0_107 = arith.constant 0 : index
    %c0_108 = arith.constant 0 : index
    %304 = vector.load %arg5[%c1_106, %c0_107, %c0_108] : memref<2x1x64xf32, #tpu.memory_space<vmem>>, vector<1x1x64xf32>
    %305 = vector.shape_cast %304 : vector<1x1x64xf32> to vector<1x64xf32>
    %306 = vector.broadcast %305 : vector<1x64xf32> to vector<16x64xf32>
    %307 = arith.addf %303, %306 : vector<16x64xf32>
    %cst_109 = arith.constant 0.000000e+00 : f32
    %308 = vector.broadcast %cst_109 : f32 to vector<16x64xf32>
    %309 = arith.maximumf %307, %308 : vector<16x64xf32>
    %c1_110 = arith.constant 1 : index
    %c0_111 = arith.constant 0 : index
    %c0_112 = arith.constant 0 : index
    %310 = vector.load %arg6[%c1_110, %c0_111, %c0_112] : memref<2x64x32xf32, #tpu.memory_space<vmem>>, vector<1x64x32xf32>
    %311 = vector.shape_cast %310 : vector<1x64x32xf32> to vector<64x32xf32>
    %cst_113 = arith.constant dense<0.000000e+00> : vector<16x32xf32>
    %312 = tpu.matmul %309, %311, %cst_113 {dimension_numbers = #tpu.dot_dimension_numbers<[1], [0], [0], [1], [0, 0, 1, 1], [], []>} : vector<16x64xf32>, vector<64x32xf32>, vector<16x32xf32> -> vector<16x32xf32>
    %c1_114 = arith.constant 1 : index
    %c0_115 = arith.constant 0 : index
    %c0_116 = arith.constant 0 : index
    %313 = vector.load %arg7[%c1_114, %c0_115, %c0_116] : memref<2x1x32xf32, #tpu.memory_space<vmem>>, vector<1x1x32xf32>
    %314 = vector.shape_cast %313 : vector<1x1x32xf32> to vector<1x32xf32>
    %315 = vector.broadcast %314 : vector<1x32xf32> to vector<16x32xf32>
    %316 = arith.addf %312, %315 : vector<16x32xf32>
    %317 = arith.addf %275, %316 : vector<16x32xf32>
    %c8 = arith.constant 8 : index
    %318 = memref.load %arg8[%c8] : memref<10xf32, #tpu.memory_space<smem>>
    %c9 = arith.constant 9 : index
    %319 = memref.load %arg8[%c9] : memref<10xf32, #tpu.memory_space<smem>>
    %cst_117 = arith.constant dense<0.000000e+00> : vector<16xf32>
    %320 = vector.multi_reduction <add>, %317, %cst_117 [1] : vector<16x32xf32> to vector<16xf32>
    %321 = vector.shape_cast %320 : vector<16xf32> to vector<16x1xf32>
    %cst_118 = arith.constant 3.200000e+01 : f32
    %322 = vector.broadcast %cst_118 : f32 to vector<16x1xf32>
    %323 = arith.divf %321, %322 : vector<16x1xf32>
    %324 = vector.broadcast %323 : vector<16x1xf32> to vector<16x32xf32>
    %325 = arith.subf %317, %324 : vector<16x32xf32>
    %326 = arith.mulf %325, %325 : vector<16x32xf32>
    %cst_119 = arith.constant dense<0.000000e+00> : vector<16xf32>
    %327 = vector.multi_reduction <add>, %326, %cst_119 [1] : vector<16x32xf32> to vector<16xf32>
    %328 = vector.shape_cast %327 : vector<16xf32> to vector<16x1xf32>
    %cst_120 = arith.constant 0.0322580636 : f32
    %329 = vector.broadcast %cst_120 : f32 to vector<16x1xf32>
    %330 = arith.mulf %328, %329 : vector<16x1xf32>
    %331 = math.sqrt %330 : vector<16x1xf32>
    %cst_121 = arith.constant 9.99999974E-6 : f32
    %332 = vector.broadcast %cst_121 : f32 to vector<16x1xf32>
    %333 = arith.addf %331, %332 : vector<16x1xf32>
    %334 = tpu.reciprocal %333 {approx = true} : vector<16x1xf32> -> vector<16x1xf32>
    %335 = vector.broadcast %323 : vector<16x1xf32> to vector<16x32xf32>
    %336 = arith.subf %317, %335 : vector<16x32xf32>
    %337 = vector.broadcast %318 : f32 to vector<16x32xf32>
    %338 = arith.mulf %337, %336 : vector<16x32xf32>
    %339 = vector.broadcast %334 : vector<16x1xf32> to vector<16x32xf32>
    %340 = arith.mulf %338, %339 : vector<16x32xf32>
    %341 = vector.broadcast %319 : f32 to vector<16x32xf32>
    %342 = arith.addf %340, %341 : vector<16x32xf32>
    %c0_122 = arith.constant 0 : index
    %c0_123 = arith.constant 0 : index
    %343 = vector.load %arg9[%c0_122, %c0_123] : memref<16x32xf32, #tpu.memory_space<vmem>>, vector<16x32xf32>
    tpu.vector_store %arg9[%c0_122, %c0_123], %342 {strides = array<i32>} : memref<16x32xf32, #tpu.memory_space<vmem>>, vector<16x32xf32>,
    return
  }
}

</mosaic_0001>

<bundles_post_ra>
// kernel: encoder_forward.1
= control target key start
LH: loop header
LB: loop body
LE: loop exit
PB: predicated region body
PF: predicated region fallthrough
CT: control target
= control target key end

     0   :  { %14 = vsyncpa [#allocation4], 0  ;;  %s4568_s0 = inlined_call_operand.vmem [shape: f32[16,32], index: 0, kind: input, shape index: {}]   ;;  %s4569_s1 = inlined_call_operand.vmem [shape: f32[16,16], index: 1, kind: input, shape index: {}]   ;;  %s4570_s2 = inlined_call_operand.vmem [shape: f32[2,32,96], index: 2, kind: input, shape index: {}]   ;;  %s4571_s3 = inlined_call_operand.vmem [shape: f32[2,32,32], index: 3, kind: input, shape index: {}]   ;;  %s4572_s4 = inlined_call_operand.vmem [shape: f32[2,32,64], index: 4, kind: input, shape index: {}]   ;;  %s4573_s5 = inlined_call_operand.vmem [shape: f32[2,1,64], index: 5, kind: input, shape index: {}]   ;;  %s4574_s6 = inlined_call_operand.vmem [shape: f32[2,64,32], index: 6, kind: input, shape index: {}]   ;;  %s4575_s7 = inlined_call_operand.vmem [shape: f32[2,1,32], index: 7, kind: input, shape index: {}]   ;;  %s4576_s8 = inlined_call_operand.vmem [shape: f32[10], index: 8, kind: input, shape index: {}]   ;;  %s4577_s9 = inlined_call_operand.hbm [shape: f32[16,32], index: 9, kind: output, shape index: {}]  }
   0x1   :  { %15 = vsyncpa [#allocation3], 0  ;;  %s38_s11 = sshll.u32 %s4576_s8, 4  ;;  %s39_s11 = int_to_ptr.vmem [resolvable:$true] %s38_s11 }
   0x2   :  { %s4004_s12 = scalar_lea.vmem %s39_s11, 16  ;;  %p4009_p1 = scmp.lt.s32.totalorder %s39_s11, %s39_s11 }
   0x3   :  { %p4005_p0 = scmp.ne.s32.totalorder %s39_s11, %s4004_s12  ;;  %p4010_p2 = scmp.lt.s32.totalorder %s4004_s12, %s4004_s12 }
   0x5   :  { %p4011_p3 = por %p4010_p2, %p4009_p1 }
   0x7   :  { %p4012_p4 = pnand %p4011_p3, %p4005_p0 }
   0x9   :  { %4015 = shalt.err (!%p4012_p4)
}
   0xa   :  { %s4042_s13 = smov [#allocation2]  }
   0xb   :  { %41 = dma.vmem_to_smem %s39_s11, 16, %s4042_s13, [#allocation4]  }
   0xc   :  { %4038 = dma.done.wait [#allocation4], 16  }
   0xd   :  { %4039 = vsyncadd [#allocation4], 4294967280 }
   0xe   :  { %45 = sfence }
   0xf   :  { %v4113_v0 = vld [vmem:[%s4568_s0] sm:$0xff]  ;;  %vm52_vm0 = vcmask 261120   ;;  %v4118_v1 = vld [vmem:[%s4568_s0 + $0x8] sm:$0xff]  ;;  %v102_v16 = vld [vmem:[%s4570_s2 + $0x10] sm:$0xff]  ;;  %s50_s24 = sld [smem:[#allocation2]]  ;;  %s3170_s25 = sld [smem:[#allocation2 + $0x1]] }
  0x10   :  { %v53_v2 = vsel %vm52_vm0, %v4113_v0, 0.0  ;;  %v56_v3 = vsel %vm52_vm0, %v4118_v1, 0.0  ;;  %v100_v14 = vld [vmem:[%s4570_s2] sm:$0xff]  ;;  %v101_v15 = vld [vmem:[%s4570_s2 + $0x8] sm:$0xff]  ;;  %v103_v18 = vld [vmem:[%s4570_s2 + $0x18] sm:$0xff]  ;;  %vm195_vm5 = vcmask 64512  }
  0x11   :  { %54 = vadd.xlane.f32.xlu0 %v53_v2  ;;  %v3647_v17 = vpack.c.bf16 %v101_v15, %v100_v14  ;;  %v3651_v19 = vpack.c.bf16 %v103_v18, %v102_v16  ;;  %s4043_s26 = smov 88   ;;  %s4044_s27 = smov 96   ;;  %vm4168_vm6 = vmpackc.low %vm195_vm5, %vm195_vm5  ;;  %vm283_vm7 = vcmask 130048   ;;  %vm1492_vm12 = vcmask 523264  }
  0x12   :  { %s4045_s28 = smov 120   ;;  %s4046_s29 = smov 80  }
  0x13   :  { %3648 = vmatprep.subr.bf16.mxu1 %v3647_v17  ;;  %s4047_s30 = smov 112   ;;  %s4048_s14 = smov 64  }
  0x14   :  { %3650 = vmatpush3.bf16.msra.mxu1 %v3647_v17  ;;  %s4049_s15 = smov 72   ;;  %s4050_s8 = smov 104  }
  0x15   :  { %57 = vadd.xlane.f32.xlu0 %v56_v3  ;;  %3652 = vmatprep.subr.bf16.mxu1 %v3651_v19  ;;  %v92_v36 = vstv %s50_s24  ;;  %v97_v39 = vstv %s3170_s25  ;;  %s4051_s16 = smov 56   ;;  %s4052_s20 = smov 48  }
  0x16   :  { %s4053_s23 = smov 40   ;;  %s3205_s21 = sld [smem:[#allocation2 + $0x2]] }
  0x17   :  { %s3206_s22 = sld [smem:[#allocation2 + $0x3]]  ;;  %s3214_s12 = sld [smem:[#allocation2 + $0x5]] }
  0x18   :  { %3654 = vmatpush3.bf16.msra.mxu1 %v3651_v19 }
  0x9e   :  { %v55_v4 = vpop.xlane.xlu0 %54 }
  0x9f   :  { %v60_v5 = vmul.f32 0.03125, %v55_v4 }
  0xa1   :  { %v62_v6 = vsub.f32 %v4113_v0, %v60_v5  ;;  %v4193_v5 = vld [vmem:[%s4569_s1 + $0x8] sm:$0xff] }
  0xa2   :  { %v58_v7 = vpop.xlane.xlu0 %57 }
  0xa3   :  { %v61_v8 = vmul.f32 0.03125, %v58_v7  ;;  %v64_v9 = vmul.f32 %v62_v6, %v62_v6  ;;  %v93_v37 = vmul.f32 %v92_v36, %v62_v6 }
  0xa5   :  { %v63_v10 = vsub.f32 %v4118_v1, %v61_v8  ;;  %v66_v11 = vsel %vm52_vm0, %v64_v9, 0.0  ;;  %v4198_v8 = vld [vmem:[%s4569_s1] sm:$0xff] }
  0xa6   :  { %67 = vadd.xlane.f32.xlu1 %v66_v11 }
  0xa7   :  { %v65_v12 = vmul.f32 %v63_v10, %v63_v10  ;;  %v94_v41 = vmul.f32 %v92_v36, %v63_v10 }
  0xa9   :  { %v69_v13 = vsel %vm52_vm0, %v65_v12, 0.0 }
  0xaa   :  { %70 = vadd.xlane.f32.xlu1 %v69_v13 }
 0x133   :  { %v68_v20 = vpop.xlane.xlu1 %67 }
 0x134   :  { %v72_v21 = vmul.f32 0.032258064, %v68_v20 }
 0x136   :  { %3898 = vrsqrt.f32 %v72_v21  ;;  %vm76_vm1 = vcmp.eq.f32.partialorder %v72_v21, inf  ;;  %v79_v26 = vand.u32 2147483648, %v72_v21  ;;  %vm78_vm2 = vcmp.eq.f32.partialorder %v72_v21, 0.0 }
 0x137   :  { %v71_v22 = vpop.xlane.xlu1 %70 }
 0x138   :  { %v73_v23 = vmul.f32 0.032258064, %v71_v22 }
 0x13a   :  { %3900 = vrsqrt.f32 %v73_v23  ;;  %vm83_vm3 = vcmp.eq.f32.partialorder %v73_v23, inf  ;;  %v86_v32 = vand.u32 2147483648, %v73_v23  ;;  %vm85_vm4 = vcmp.eq.f32.partialorder %v73_v23, 0.0 }
 0x140   :  { %v3899_v24 = vpop.eup %3898 }
 0x141   :  { %v75_v25 = vmul.f32 %v3899_v24, %v72_v21 }
 0x143   :  { %v77_v27 = vsel %vm76_vm1, %v72_v21, %v75_v25 }
 0x144   :  { %v3901_v28 = vpop.eup %3900  ;;  %v80_v29 = vsel %vm78_vm2, %v79_v26, %v77_v27 }
 0x145   :  { %v82_v30 = vmul.f32 %v3901_v28, %v73_v23  ;;  %v88_v31 = vadd.f32 1e-05, %v80_v29 }
 0x147   :  { %v84_v33 = vsel %vm83_vm3, %v73_v23, %v82_v30  ;;  %3902 = vrcp.f32 %v88_v31 }
 0x148   :  { %v87_v34 = vsel %vm85_vm4, %v86_v32, %v84_v33 }
 0x149   :  { %v89_v35 = vadd.f32 1e-05, %v87_v34 }
 0x14b   :  { %3904 = vrcp.f32 %v89_v35 }
 0x151   :  { %v3903_v38 = vpop.eup %3902 }
 0x152   :  { %v95_v40 = vmul.f32 %v3903_v38, %v93_v37 }
 0x154   :  { %v98_v42 = vadd.f32 %v97_v39, %v95_v40 }
 0x155   :  { %v3905_v43 = vpop.eup %3904 }
 0x156   :  { %v96_v44 = vmul.f32 %v3905_v43, %v94_v41  ;;  %3421 = vmatprep.mubr.msk.f32.mxu1 %vm52_vm0, %v98_v42 }
 0x158   :  { %v99_v45 = vadd.f32 %v97_v39, %v96_v44 }
 0x15a   :  { %3422 = vmatmul.mubr.msk.f32.vlgmr.msra.gmra.mrb[0].mxu1 %vm52_vm0, %v99_v45 }
 0x22d   :  { %v4142_v46 = vpop.f32.mrb[0].mxu1 }
 0x22e   :  { %v4144_v47 = vpop.f32.mrb[1].mxu1 }
 0x22f   :  { %3428 = vmatprep.mubr.msk.f32.mxu1 %vm195_vm5, %v4144_v47  ;;  %v4150_v48 = vpack.i.bf16 %v4142_v46, %v4144_v47 }
 0x231   :  { %3824 = vrot.lane.b32.xlu1 %v4150_v48, %s4043_s26  ;;  %3819 = vrot.lane.b32.xlu0 %v4150_v48, %s4044_s27 }
 0x235   :  { %393 = vrot.lane.b32.xlu1 %v4144_v47, %s4045_s28  ;;  %3829 = vrot.lane.b32.xlu0 %v4150_v48, %s4046_s29 }
 0x239   :  { %395 = vrot.lane.b32.xlu1 %v4142_v46, %s4045_s28  ;;  %761 = vrot.lane.b32.xlu0 %v4142_v46, %s4047_s30 }
 0x23d   :  { %759 = vrot.lane.b32.xlu1 %v4144_v47, %s4047_s30 }
 0x2a3   :  { %v3825_v49 = vpop.permute.xlu1 %3824  ;;  %v3820_v50 = vpop.permute.xlu0 %3819 }
 0x2a4   :  { %v3827_v51 = vunpack.i.h.bf16 %v3825_v49  ;;  %v3826_v52 = vunpack.i.l.bf16 %v3825_v49  ;;  %v3822_v53 = vunpack.i.h.bf16 %v3820_v50  ;;  %v3821_v54 = vunpack.i.l.bf16 %v3820_v50 }
 0x2a6   :  { %v3655_v56 = vpack.c.bf16 %v3822_v53, %v3821_v54  ;;  %v3665_v57 = vpack.c.bf16 %v3827_v51, %v3826_v52 }
 0x2a7   :  { %v3830_v58 = vpop.permute.xlu0 %3829  ;;  %v394_v59 = vpop.permute.xlu1 %393 }
 0x2a8   :  { %3657 = vmatprep.subr.msk.bf16.mxu1 %vm4168_vm6, %v3655_v56  ;;  %v3832_v60 = vunpack.i.h.bf16 %v3830_v58  ;;  %v3831_v61 = vunpack.i.l.bf16 %v3830_v58 }
 0x2a9   :  { %3660 = vmatpush3.bf16.xpose.msk.msra.mxu1 %vm4168_vm6, %v3655_v56 }
 0x2aa   :  { %3667 = vmatprep.subr.msk.bf16.mxu1 %vm4168_vm6, %v3665_v57  ;;  %v3675_v62 = vpack.c.bf16 %v3832_v60, %v3831_v61 }
 0x2ab   :  { %v396_v63 = vpop.permute.xlu1 %395  ;;  %v762_v3 = vpop.permute.xlu0 %761 }
 0x2af   :  { %v760_v2 = vpop.permute.xlu1 %759 }
 0x2b0   :  { %3429 = vmatmul.mubr.msk.f32.vlgmr.msra.gmra.mrb[2].mxu1 %vm195_vm5, %v4142_v46 }
 0x2b1   :  { %3670 = vmatpush3.bf16.xpose.msk.msra.mxu1 %vm4168_vm6, %v3665_v57  ;;  %3442 = vmatprep.mubr.msk.f32.mxu1 %vm195_vm5, %v394_v59 }
 0x2b2   :  { %3677 = vmatprep.subr.msk.bf16.mxu1 %vm4168_vm6, %v3675_v62 }
 0x2b8   :  { %3443 = vmatmul.mubr.msk.f32.vlgmr.msra.gmra.mrb[4].mxu1 %vm195_vm5, %v396_v63 }
 0x2b9   :  { %3680 = vmatpush3.bf16.xpose.msk.msra.mxu1 %vm4168_vm6, %v3675_v62  ;;  %3466 = vmatprep.mubr.msk.f32.mxu1 %vm195_vm5, %v760_v2 }
 0x2c0   :  { %3467 = vmatmul.mubr.msk.f32.vlgmr.msra.gmra.mrb[6].mxu1 %vm195_vm5, %v762_v3 }
 0x383   :  { %v3430_v4 = vpop.f32.mrb[2].mxu1 }
 0x384   :  { %v280_v6 = vmul.f32 0.35355338, %v3430_v4  ;;  %v270_v7 = vpop.f32.mrb[3].mxu1 }
 0x385   :  { %v279_v9 = vmul.f32 0.35355338, %v270_v7 }
 0x386   :  { %v282_v10 = vadd.f32 %v280_v6, %v4193_v5 }
 0x387   :  { %v281_v11 = vadd.f32 %v279_v9, %v4198_v8 }
 0x388   :  { %v287_v12 = vsel %vm283_vm7, %v282_v10, -inf }
 0x389   :  { %288 = vmax.xlane.f32.xlu0 %v287_v12  ;;  %v284_v13 = vsel %vm283_vm7, %v281_v11, -inf }
 0x38a   :  { %285 = vmax.xlane.f32.xlu1 %v284_v13 }
 0x38b   :  { %v3444_v14 = vpop.f32.mrb[4].mxu1 }
 0x38c   :  { %v475_v15 = vpop.f32.mrb[5].mxu1  ;;  %v485_v16 = vmul.f32 0.35355338, %v3444_v14 }
 0x38d   :  { %v484_v17 = vmul.f32 0.35355338, %v475_v15 }
 0x38e   :  { %v487_v20 = vadd.f32 %v485_v16, %v4193_v5 }
 0x38f   :  { %v486_v18 = vadd.f32 %v484_v17, %v4198_v8 }
 0x390   :  { %v491_v23 = vsel %vm283_vm7, %v487_v20, -inf }
 0x391   :  { %v488_v19 = vsel %vm283_vm7, %v486_v18, -inf }
 0x392   :  { %489 = vmax.xlane.f32.xlu0 %v488_v19 }
 0x393   :  { %v3468_v21 = vpop.f32.mrb[6].mxu1 }
 0x394   :  { %v841_v22 = vpop.f32.mrb[7].mxu1  ;;  %v851_v49 = vmul.f32 0.35355338, %v3468_v21 }
 0x395   :  { %v850_v44 = vmul.f32 0.35355338, %v841_v22 }
 0x396   :  { %492 = vmax.xlane.f32.xlu0 %v491_v23  ;;  %v853_v51 = vadd.f32 %v851_v49, %v4193_v5 }
 0x397   :  { %v852_v45 = vadd.f32 %v850_v44, %v4198_v8 }
 0x398   :  { %v857_v52 = vsel %vm283_vm7, %v853_v51, -inf }
 0x399   :  { %v854_v50 = vsel %vm283_vm7, %v852_v45, -inf }
 0x416   :  { %v289_v24 = vpop.xlane.xlu0 %288 }
 0x417   :  { %v291_v25 = vsub.f32 %v282_v10, %v289_v24  ;;  %v286_v26 = vpop.xlane.xlu1 %285 }
 0x418   :  { %v290_v27 = vsub.f32 %v281_v11, %v286_v26 }
 0x419   :  { %v294_v28 = vmul.f32 1.442695, %v291_v25 }
 0x41a   :  { %v292_v29 = vmul.f32 1.442695, %v290_v27 }
 0x41b   :  { %3906 = vpow2.f32 %v294_v28  ;;  %v105_v28 = vld [vmem:[%s4571_s3 + $0x8] sm:$0xff] }
 0x41c   :  { %3908 = vpow2.f32 %v292_v29  ;;  %v104_v29 = vld [vmem:[%s4571_s3] sm:$0xff] }
 0x41f   :  { %v490_v30 = vpop.xlane.xlu0 %489 }
 0x420   :  { %v494_v31 = vsub.f32 %v486_v18, %v490_v30 }
 0x422   :  { %v496_v32 = vmul.f32 1.442695, %v494_v31 }
 0x423   :  { %v493_v33 = vpop.xlane.xlu0 %492 }
 0x424   :  { %3910 = vpow2.f32 %v496_v32  ;;  %v495_v34 = vsub.f32 %v487_v20, %v493_v33 }
 0x425   :  { %v3907_v35 = vpop.eup %3906 }
 0x426   :  { %v3909_v36 = vpop.eup %3908  ;;  %v498_v37 = vmul.f32 1.442695, %v495_v34  ;;  %v299_v38 = vsel %vm283_vm7, %v3907_v35, 0.0 }
 0x427   :  { %300 = vadd.xlane.f32.xlu0 %v299_v38  ;;  %v296_v39 = vsel %vm283_vm7, %v3909_v36, 0.0 }
 0x428   :  { %3912 = vpow2.f32 %v498_v37  ;;  %297 = vadd.xlane.f32.xlu1 %v296_v39 }
 0x42e   :  { %v3911_v40 = vpop.eup %3910 }
 0x42f   :  { %v500_v41 = vsel %vm283_vm7, %v3911_v40, 0.0 }
 0x430   :  { %501 = vadd.xlane.f32.xlu1 %v500_v41 }
 0x432   :  { %v3913_v42 = vpop.eup %3912 }
 0x433   :  { %v503_v43 = vsel %vm283_vm7, %v3913_v42, 0.0 }
 0x434   :  { %504 = vadd.xlane.f32.xlu0 %v503_v43 }
 0x441   :  { %3834 = vrot.lane.b32.xlu1 %v4150_v48, %s4048_s14 }
 0x445   :  { %3844 = vrot.lane.b32.xlu1 %v4150_v48, %s4049_s15 }
 0x449   :  { %1046 = vrot.lane.b32.xlu1 %v4144_v47, %s4050_s8 }
 0x44a   :  { %3839 = vrot.lane.b32.xlu0 %v4150_v48, %s4051_s16 }
 0x44d   :  { %1048 = vrot.lane.b32.xlu1 %v4142_v46, %s4050_s8 }
 0x469   :  { %855 = vmax.xlane.f32.xlu0 %v854_v50 }
 0x471   :  { %858 = vmax.xlane.f32.xlu1 %v857_v52 }
 0x4b4   :  { %v301_v53 = vpop.xlane.xlu0 %300 }
 0x4b5   :  { %v298_v47 = vpop.xlane.xlu1 %297 }
 0x4b6   :  { %3914 = vrcp.f32 %v298_v47 }
 0x4b7   :  { %3916 = vrcp.f32 %v301_v53 }
 0x4bd   :  { %v502_v54 = vpop.xlane.xlu1 %501 }
 0x4be   :  { %3918 = vrcp.f32 %v502_v54  ;;  %v106_v54 = vld [vmem:[%s4571_s3 + $0x10] sm:$0xff] }
 0x4c0   :  { %v3915_v56 = vpop.eup %3914 }
 0x4c1   :  { %v505_v46 = vpop.xlane.xlu0 %504  ;;  %v3835_v57 = vpop.permute.xlu1 %3834  ;;  %v304_v58 = vmul.f32 %v3915_v56, %v3909_v36 }
 0x4c2   :  { %3920 = vrcp.f32 %v505_v46  ;;  %v3837_v59 = vunpack.i.h.bf16 %v3835_v57  ;;  %v3836_v60 = vunpack.i.l.bf16 %v3835_v57  ;;  %v3917_v62 = vpop.eup %3916 }
 0x4c3   :  { %3435 = vmatprep.mubr.msk.f32.mxu0 %vm283_vm7, %v304_v58  ;;  %v305_v12 = vmul.f32 %v3917_v62, %v3907_v35 }
 0x4c4   :  { %v3661_v61 = vpack.c.bf16 %v3837_v59, %v3836_v60 }
 0x4c5   :  { %v3840_v63 = vpop.permute.xlu0 %3839  ;;  %v3845_v2 = vpop.permute.xlu1 %3844 }
 0x4c6   :  { %v3842_v3 = vunpack.i.h.bf16 %v3840_v63  ;;  %v3841_v4 = vunpack.i.l.bf16 %v3840_v63  ;;  %v3847_v6 = vunpack.i.h.bf16 %v3845_v2  ;;  %v3846_v7 = vunpack.i.l.bf16 %v3845_v2  ;;  %3662 = vmatprep.subr.bf16.mxu0 %v3661_v61 }
 0x4c7   :  { %3664 = vmatpush3.bf16.msra.mxu0 %v3661_v61 }
 0x4c8   :  { %v3919_v9 = vpop.eup %3918  ;;  %v3671_v10 = vpack.c.bf16 %v3842_v3, %v3841_v4  ;;  %v3685_v11 = vpack.c.bf16 %v3847_v6, %v3846_v7 }
 0x4c9   :  { %v1047_v13 = vpop.permute.xlu1 %1046  ;;  %v508_v14 = vmul.f32 %v3919_v9, %v3911_v40 }
 0x4ca   :  { %3436 = vmatmul.mubr.msk.f32.vlgmr.msra.gmra.mrb[0].mxu0 %vm283_vm7, %v305_v12  ;;  %3672 = vmatprep.subr.bf16.mxu0 %v3671_v10 }
 0x4cb   :  { %3687 = vmatprep.subr.msk.bf16.mxu1 %vm4168_vm6, %v3685_v11  ;;  %3485 = vmatprep.mubr.msk.f32.mxu1 %vm195_vm5, %v1047_v13  ;;  %v107_v13 = vld [vmem:[%s4571_s3 + $0x18] sm:$0xff] }
 0x4cc   :  { %v3921_v15 = vpop.eup %3920  ;;  %3674 = vmatpush3.bf16.msra.mxu0 %v3671_v10  ;;  %3449 = vmatprep.mubr.msk.f32.mxu0 %vm283_vm7, %v508_v14 }
 0x4cd   :  { %v509_v16 = vmul.f32 %v3921_v15, %v3913_v42  ;;  %3690 = vmatpush3.bf16.xpose.msk.msra.mxu1 %vm4168_vm6, %v3685_v11  ;;  %v1049_v17 = vpop.permute.xlu1 %1048  ;;  %3452 = vmatprep.subr.mxu0 %v105_v28 }
 0x4cf   :  { %3450 = vmatmul.mubr.msk.f32.vlgmr.msra.gmra.mrb[2].mxu0 %vm283_vm7, %v509_v16 }
 0x4d0   :  { %3453 = vmatpush3.msra.mxu0 %v105_v28 }
 0x4d1   :  { %3457 = vmatprep.subr.mxu0 %v104_v29 }
 0x4d4   :  { %3486 = vmatmul.mubr.msk.f32.vlgmr.msra.gmra.mrb[8].mxu1 %vm195_vm5, %v1049_v17 }
 0x4f6   :  { %v856_v18 = vpop.xlane.xlu0 %855 }
 0x4f7   :  { %v860_v19 = vsub.f32 %v852_v45, %v856_v18 }
 0x4f9   :  { %v862_v22 = vmul.f32 1.442695, %v860_v19 }
 0x4fe   :  { %v859_v20 = vpop.xlane.xlu1 %858 }
 0x4ff   :  { %v861_v21 = vsub.f32 %v853_v51, %v859_v20 }
 0x501   :  { %v864_v23 = vmul.f32 1.442695, %v861_v21 }
 0x503   :  { %3922 = vpow2.f32 %v864_v23 }
 0x504   :  { %3924 = vpow2.f32 %v862_v22 }
 0x50d   :  { %v3923_v24 = vpop.eup %3922 }
 0x50e   :  { %v869_v25 = vsel %vm283_vm7, %v3923_v24, 0.0  ;;  %v3925_v26 = vpop.eup %3924 }
 0x50f   :  { %870 = vadd.xlane.f32.xlu0 %v869_v25  ;;  %v866_v27 = vsel %vm283_vm7, %v3925_v26, 0.0 }
 0x513   :  { %867 = vadd.xlane.f32.xlu0 %v866_v27 }
 0x529   :  { %3849 = vrot.lane.b32.xlu0 %v4150_v48, %s4052_s20 }
 0x59c   :  { %v871_v30 = vpop.xlane.xlu0 %870 }
 0x59d   :  { %v3437_v31 = vpop.f32.mrb[0].mxu0 }
 0x59e   :  { %v384_v32 = vpop.f32.mrb[1].mxu0 }
 0x5a0   :  { %v868_v33 = vpop.xlane.xlu0 %867 }
 0x5a1   :  { %3926 = vrcp.f32 %v868_v33  ;;  %v1383_v33 = vld [vmem:[%s4572_s4] sm:$0xff] }
 0x5a2   :  { %3928 = vrcp.f32 %v871_v30  ;;  %v3451_v34 = vpop.f32.mrb[2].mxu0 }
 0x5a3   :  { %v588_v35 = vpop.f32.mrb[3].mxu0 }
 0x5a4   :  { %v3850_v36 = vpop.permute.xlu0 %3849  ;;  %3454 = vmatprep.mubr.msk.f32.mxu0 %vm195_vm5, %v588_v35  ;;  %v1385_v35 = vld [vmem:[%s4572_s4 + $0x10] sm:$0xff] }
 0x5a5   :  { %v3852_v37 = vunpack.i.h.bf16 %v3850_v36  ;;  %v3851_v38 = vunpack.i.l.bf16 %v3850_v36  ;;  %3455 = vmatmul.mubr.msk.f32.vlgmr.msra.gmra.mrb[4].mxu0 %vm195_vm5, %v3451_v34  ;;  %v1384_v34 = vld [vmem:[%s4572_s4 + $0x8] sm:$0xff] }
 0x5a6   :  { %3459 = vmatprep.mubr.msk.f32.mxu0 %vm195_vm5, %v384_v32  ;;  %3458 = vmatpush3.msra.mxu0 %v104_v29  ;;  %v3695_v36 = vpack.c.bf16 %v1384_v34, %v1383_v33 }
 0x5a7   :  { %v3681_v39 = vpack.c.bf16 %v3852_v37, %v3851_v38  ;;  %v3487_v40 = vpop.f32.mrb[8].mxu1  ;;  %v1386_v37 = vld [vmem:[%s4572_s4 + $0x18] sm:$0xff] }
 0x5a8   :  { %v1128_v41 = vpop.f32.mrb[9].mxu1  ;;  %v1138_v42 = vmul.f32 0.35355338, %v3487_v40  ;;  %v3699_v38 = vpack.c.bf16 %v1386_v37, %v1385_v35  ;;  %3696 = vmatprep.subr.bf16.mxu1 %v3695_v36  ;;  %v1478_v40 = vld [vmem:[%s4574_s6 + $0x8] sm:$0xff] }
 0x5a9   :  { %v1137_v43 = vmul.f32 0.35355338, %v1128_v41  ;;  %3682 = vmatprep.subr.bf16.mxu0 %v3681_v39  ;;  %3698 = vmatpush3.bf16.msra.mxu1 %v3695_v36  ;;  %v1479_v41 = vld [vmem:[%s4574_s6 + $0x10] sm:$0xff] }
 0x5aa   :  { %v1140_v52 = vadd.f32 %v1138_v42, %v4193_v5  ;;  %3700 = vmatprep.subr.bf16.mxu1 %v3699_v38 }
 0x5ab   :  { %v3927_v44 = vpop.eup %3926  ;;  %v1139_v45 = vadd.f32 %v1137_v43, %v4198_v8  ;;  %v1480_v43 = vld [vmem:[%s4574_s6 + $0x18] sm:$0xff] }
 0x5ac   :  { %v3929_v49 = vpop.eup %3928  ;;  %v874_v50 = vmul.f32 %v3927_v44, %v3925_v26  ;;  %v1144_v53 = vsel %vm283_vm7, %v1140_v52, -inf  ;;  %v3707_v44 = vpack.c.bf16 %v1480_v43, %v1479_v41  ;;  %v3216_v43 = vld [vmem:[%s4570_s2 + $0x28] sm:$0xff] }
 0x5ad   :  { %v1141_v51 = vsel %vm283_vm7, %v1139_v45, -inf  ;;  %3460 = vmatmul.mubr.msk.f32.vlgmr.msra.gmra.mrb[4].mxu0 %vm195_vm5, %v3437_v31  ;;  %v875_v47 = vmul.f32 %v3929_v49, %v3923_v24  ;;  %3702 = vmatpush3.bf16.msra.mxu1 %v3699_v38  ;;  %v1482_v49 = vld [vmem:[%s4574_s6 + $0x28] sm:$0xff] }
 0x5ae   :  { %1142 = vmax.xlane.f32.xlu1 %v1141_v51  ;;  %3684 = vmatpush3.bf16.msra.mxu0 %v3681_v39  ;;  %v1477_v39 = vld [vmem:[%s4574_s6] sm:$0xff] }
 0x5af   :  { %3473 = vmatprep.mubr.msk.f32.mxu0 %vm283_vm7, %v874_v50  ;;  %3476 = vmatprep.subr.mxu0 %v106_v54  ;;  %v3703_v42 = vpack.c.bf16 %v1478_v40, %v1477_v39 }
 0x5b1   :  { %3474 = vmatmul.mubr.msk.f32.vlgmr.msra.gmra.mrb[6].mxu0 %vm283_vm7, %v875_v47 }
 0x5b2   :  { %1145 = vmax.xlane.f32.xlu1 %v1144_v53  ;;  %3477 = vmatpush3.msra.mxu0 %v106_v54 }
 0x63b   :  { %v1143_v56 = vpop.xlane.xlu1 %1142 }
 0x63c   :  { %v1147_v46 = vsub.f32 %v1139_v45, %v1143_v56  ;;  %v1481_v45 = vld [vmem:[%s4574_s6 + $0x20] sm:$0xff] }
 0x63d   :  { %v3711_v50 = vpack.c.bf16 %v1482_v49, %v1481_v45  ;;  %v3218_v49 = vld [vmem:[%s4570_s2 + $0x38] sm:$0xff] }
 0x63e   :  { %v1149_v59 = vmul.f32 1.442695, %v1147_v46 }
 0x63f   :  { %v1146_v57 = vpop.xlane.xlu1 %1145 }
 0x640   :  { %v1148_v58 = vsub.f32 %v1140_v52, %v1146_v57 }
 0x642   :  { %v1151_v60 = vmul.f32 1.442695, %v1148_v58 }
 0x644   :  { %3930 = vpow2.f32 %v1151_v60 }
 0x645   :  { %3932 = vpow2.f32 %v1149_v59 }
 0x64e   :  { %v3931_v61 = vpop.eup %3930 }
 0x64f   :  { %v1156_v62 = vsel %vm283_vm7, %v3931_v61, 0.0  ;;  %v3933_v63 = vpop.eup %3932 }
 0x650   :  { %1157 = vadd.xlane.f32.xlu1 %v1156_v62  ;;  %v1153_v2 = vsel %vm283_vm7, %v3933_v63, 0.0 }
 0x654   :  { %1154 = vadd.xlane.f32.xlu1 %v1153_v2 }
 0x665   :  { %3854 = vrot.lane.b32.xlu1 %v4150_v48, %s4053_s23 }
 0x684   :  { %v3475_v3 = vpop.f32.mrb[6].mxu0 }
 0x685   :  { %v954_v4 = vpop.f32.mrb[7].mxu0 }
 0x686   :  { %3478 = vmatprep.mubr.msk.f32.mxu0 %vm195_vm5, %v954_v4  ;;  %v1375_v4 = vstv %s3205_s21 }
 0x687   :  { %3479 = vmatmul.mubr.msk.f32.vlgmr.msra.gmra.mrb[4].mxu0 %vm195_vm5, %v3475_v3 }
 0x6dd   :  { %v1158_v6 = vpop.xlane.xlu1 %1157 }
 0x6de   :  { %3934 = vrcp.f32 %v1158_v6 }
 0x6e1   :  { %v1155_v7 = vpop.xlane.xlu1 %1154 }
 0x6e2   :  { %3936 = vrcp.f32 %v1155_v7 }
 0x6e5   :  { %v3855_v9 = vpop.permute.xlu1 %3854 }
 0x6e6   :  { %v3857_v10 = vunpack.i.h.bf16 %v3855_v9  ;;  %v3856_v11 = vunpack.i.l.bf16 %v3855_v9  ;;  %v1380_v9 = vstv %s3206_s22 }
 0x6e8   :  { %v3691_v12 = vpack.c.bf16 %v3857_v10, %v3856_v11  ;;  %v3935_v48 = vpop.eup %3934 }
 0x6e9   :  { %v1162_v16 = vmul.f32 %v3935_v48, %v3931_v61 }
 0x6ea   :  { %3692 = vmatprep.subr.bf16.mxu0 %v3691_v12 }
 0x6eb   :  { %3694 = vmatpush3.bf16.msra.mxu0 %v3691_v12 }
 0x6ec   :  { %v3937_v14 = vpop.eup %3936  ;;  %3495 = vmatprep.subr.mxu0 %v107_v13 }
 0x6ed   :  { %v1161_v15 = vmul.f32 %v3937_v14, %v3933_v63 }
 0x6ef   :  { %3492 = vmatprep.mubr.msk.f32.mxu0 %vm283_vm7, %v1161_v15  ;;  %v1483_v15 = vld [vmem:[%s4574_s6 + $0x30] sm:$0xff] }
 0x6f0   :  { %3493 = vmatmul.mubr.msk.f32.vlgmr.msra.gmra.mrb[8].mxu0 %vm283_vm7, %v1162_v16  ;;  %v1484_v16 = vld [vmem:[%s4574_s6 + $0x38] sm:$0xff] }
 0x6f1   :  { %3496 = vmatpush3.msra.mxu0 %v107_v13 }
 0x6f2   :  { %3704 = vmatprep.subr.bf16.mxu0 %v3703_v42 }
 0x7c3   :  { %v3494_v17 = vpop.f32.mrb[8].mxu0 }
 0x7c4   :  { %v1241_v18 = vpop.f32.mrb[9].mxu0 }
 0x7c5   :  { %3497 = vmatprep.mubr.msk.f32.mxu0 %vm195_vm5, %v1241_v18  ;;  %v3207_v18 = vld [vmem:[%s4573_s5] ss:$0 sm:$0xff] }
 0x7c6   :  { %3498 = vmatmul.mubr.msk.f32.vlgmr.msra.gmra.mrb[4].mxu0 %vm195_vm5, %v3494_v17  ;;  %v3715_v17 = vpack.c.bf16 %v1484_v16, %v1483_v15 }
 0x7c7   :  { %3706 = vmatpush3.bf16.msra.mxu0 %v3703_v42  ;;  %v3215_v42 = vld [vmem:[%s4570_s2 + $0x20] sm:$0xff] }
 0x7c8   :  { %3708 = vmatprep.subr.bf16.mxu0 %v3707_v44  ;;  %v3719_v45 = vpack.c.bf16 %v3216_v43, %v3215_v42 }
 0x7ca   :  { %3720 = vmatprep.subr.bf16.mxu1 %v3719_v45 }
 0x7cb   :  { %3710 = vmatpush3.bf16.msra.mxu0 %v3707_v44  ;;  %v3217_v44 = vld [vmem:[%s4570_s2 + $0x30] sm:$0xff]  ;;  %s3213_s2 = sld [smem:[#allocation2 + $0x4]] }
 0x7cc   :  { %3712 = vmatprep.subr.bf16.mxu0 %v3711_v50 }
 0x7cf   :  { %3714 = vmatpush3.bf16.msra.mxu0 %v3711_v50  ;;  %v3723_v50 = vpack.c.bf16 %v3218_v49, %v3217_v44 }
 0x7d0   :  { %3716 = vmatprep.subr.bf16.mxu0 %v3715_v17 }
 0x7d3   :  { %3718 = vmatpush3.bf16.msra.mxu0 %v3715_v17 }
 0x899   :  { %v3499_v19 = vpop.f32.mrb[4].mxu0 }
 0x89a   :  { %v4273_v20 = vadd.f32 %v3499_v19, %v4118_v1  ;;  %v1322_v21 = vpop.f32.mrb[5].mxu0 }
 0x89b   :  { %v4276_v22 = vadd.f32 %v1322_v21, %v4113_v0 }
 0x89c   :  { %v1340_v23 = vsel %vm52_vm0, %v4273_v20, 0.0 }
 0x89d   :  { %1341 = vadd.xlane.f32.xlu1 %v1340_v23  ;;  %v1337_v24 = vsel %vm52_vm0, %v4276_v22, 0.0 }
 0x89e   :  { %1338 = vadd.xlane.f32.xlu0 %v1337_v24 }
 0x92a   :  { %v1342_v25 = vpop.xlane.xlu1 %1341 }
 0x92b   :  { %v1344_v26 = vmul.f32 0.03125, %v1342_v25  ;;  %v1339_v27 = vpop.xlane.xlu0 %1338 }
 0x92c   :  { %v1343_v28 = vmul.f32 0.03125, %v1339_v27  ;;  %v3210_v27 = vld [vmem:[%s4575_s7] ss:$0 sm:$0xff] }
 0x92d   :  { %v4283_v29 = vsub.f32 %v4273_v20, %v1344_v26 }
 0x92e   :  { %v1345_v1 = vsub.f32 %v4276_v22, %v1343_v28 }
 0x92f   :  { %v1348_v31 = vmul.f32 %v4283_v29, %v4283_v29  ;;  %v1377_v11 = vmul.f32 %v1375_v4, %v4283_v29 }
 0x930   :  { %v1347_v30 = vmul.f32 %v1345_v1, %v1345_v1  ;;  %v1376_v6 = vmul.f32 %v1375_v4, %v1345_v1  ;;  %v1616_v4 = vstv %s3213_s2 }
 0x931   :  { %v1352_v32 = vsel %vm52_vm0, %v1348_v31, 0.0 }
 0x932   :  { %v1349_v0 = vsel %vm52_vm0, %v1347_v30, 0.0 }
 0x933   :  { %1350 = vadd.xlane.f32.xlu0 %v1349_v0 }
 0x937   :  { %1353 = vadd.xlane.f32.xlu0 %v1352_v32 }
 0x9c0   :  { %v1351_v51 = vpop.xlane.xlu0 %1350 }
 0x9c1   :  { %v1355_v52 = vmul.f32 0.032258064, %v1351_v51 }
 0x9c3   :  { %3938 = vrsqrt.f32 %v1355_v52  ;;  %vm1359_vm8 = vcmp.eq.f32.partialorder %v1355_v52, inf  ;;  %v1362_v46 = vand.u32 2147483648, %v1355_v52  ;;  %vm1361_vm9 = vcmp.eq.f32.partialorder %v1355_v52, 0.0 }
 0x9c4   :  { %v1354_v47 = vpop.xlane.xlu0 %1353 }
 0x9c5   :  { %v1356_v53 = vmul.f32 0.032258064, %v1354_v47 }
 0x9c7   :  { %3940 = vrsqrt.f32 %v1356_v53  ;;  %vm1366_vm10 = vcmp.eq.f32.partialorder %v1356_v53, inf  ;;  %v1369_v62 = vand.u32 2147483648, %v1356_v53  ;;  %vm1368_vm11 = vcmp.eq.f32.partialorder %v1356_v53, 0.0 }
 0x9cd   :  { %v3939_v54 = vpop.eup %3938 }
 0x9ce   :  { %v1358_v56 = vmul.f32 %v3939_v54, %v1355_v52 }
 0x9d0   :  { %v1360_v57 = vsel %vm1359_vm8, %v1355_v52, %v1358_v56 }
 0x9d1   :  { %v3941_v58 = vpop.eup %3940  ;;  %v1363_v59 = vsel %vm1361_vm9, %v1362_v46, %v1360_v57 }
 0x9d2   :  { %v1365_v60 = vmul.f32 %v3941_v58, %v1356_v53  ;;  %v1371_v61 = vadd.f32 1e-05, %v1363_v59 }
 0x9d4   :  { %v1367_v63 = vsel %vm1366_vm10, %v1356_v53, %v1365_v60  ;;  %3942 = vrcp.f32 %v1371_v61 }
 0x9d5   :  { %v1370_v2 = vsel %vm1368_vm11, %v1369_v62, %v1367_v63 }
 0x9d6   :  { %v1372_v3 = vadd.f32 1e-05, %v1370_v2 }
 0x9d8   :  { %3944 = vrcp.f32 %v1372_v3 }
 0x9de   :  { %v3943_v7 = vpop.eup %3942 }
 0x9df   :  { %v1378_v10 = vmul.f32 %v3943_v7, %v1376_v6 }
 0x9e1   :  { %v1381_v12 = vadd.f32 %v1380_v9, %v1378_v10 }
 0x9e2   :  { %v3945_v13 = vpop.eup %3944 }
 0x9e3   :  { %v1379_v48 = vmul.f32 %v3945_v13, %v1377_v11  ;;  %3508 = vmatprep.mubr.msk.f32.mxu1 %vm52_vm0, %v1381_v12 }
 0x9e5   :  { %v1382_v14 = vadd.f32 %v1380_v9, %v1379_v48  ;;  %v1621_v9 = vstv %s3214_s12 }
 0x9e7   :  { %3509 = vmatmul.mubr.msk.f32.vlgmr.msra.gmra.mrb[10].mxu1 %vm52_vm0, %v1382_v14 }
 0x9e8   :  { %3722 = vmatpush3.bf16.msra.mxu1 %v3719_v45 }
 0x9e9   :  { %3724 = vmatprep.subr.bf16.mxu1 %v3723_v50 }
 0x9ec   :  { %3726 = vmatpush3.bf16.msra.mxu1 %v3723_v50 }
 0xaba   :  { %v3510_v19 = vpop.f32.mrb[10].mxu1 }
 0xabb   :  { %v1472_v21 = vadd.f32 %v3510_v19, %v3207_v18  ;;  %v1466_v23 = vpop.f32.mrb[11].mxu1 }
 0xabc   :  { %v1467_v24 = vadd.f32 %v3207_v18, %v1466_v23 }
 0xabd   :  { %v1476_v26 = vmax.f32 %v1472_v21, 0.0 }
 0xabe   :  { %v1475_v25 = vmax.f32 %v1467_v24, 0.0 }
 0xac0   :  { %3527 = vmatprep.mubr.msk.f32.mxu0 %vm1492_vm12, %v1475_v25 }
 0xac1   :  { %3528 = vmatmul.mubr.msk.f32.vlgmr.msra.gmra.mrb[10].mxu0 %vm1492_vm12, %v1476_v26 }
 0xb94   :  { %v3529_v28 = vpop.f32.mrb[10].mxu0 }
 0xb95   :  { %v1565_v29 = vpop.f32.mrb[11].mxu0  ;;  %v1571_v1 = vadd.f32 %v3529_v28, %v3210_v27 }
 0xb96   :  { %v1566_v30 = vadd.f32 %v3210_v27, %v1565_v29 }
 0xb97   :  { %v4341_v31 = vadd.f32 %v1571_v1, %v4273_v20 }
 0xb98   :  { %v4338_v0 = vadd.f32 %v1566_v30, %v4276_v22 }
 0xb99   :  { %v1581_v33 = vsel %vm52_vm0, %v4341_v31, 0.0 }
 0xb9a   :  { %v1578_v32 = vsel %vm52_vm0, %v4338_v0, 0.0 }
 0xb9b   :  { %1579 = vadd.xlane.f32.xlu0 %v1578_v32 }
 0xb9f   :  { %1582 = vadd.xlane.f32.xlu0 %v1581_v33 }
 0xc28   :  { %v1580_v34 = vpop.xlane.xlu0 %1579 }
 0xc29   :  { %v1584_v35 = vmul.f32 0.03125, %v1580_v34 }
 0xc2b   :  { %v1586_v36 = vsub.f32 %v4338_v0, %v1584_v35 }
 0xc2c   :  { %v1583_v37 = vpop.xlane.xlu0 %1582 }
 0xc2d   :  { %v1585_v38 = vmul.f32 0.03125, %v1583_v37  ;;  %v1588_v39 = vmul.f32 %v1586_v36, %v1586_v36  ;;  %v1617_v6 = vmul.f32 %v1616_v4, %v1586_v36 }
 0xc2f   :  { %v1587_v22 = vsub.f32 %v4341_v31, %v1585_v38  ;;  %v1590_v20 = vsel %vm52_vm0, %v1588_v39, 0.0 }
 0xc30   :  { %1591 = vadd.xlane.f32.xlu0 %v1590_v20 }
 0xc31   :  { %v1589_v40 = vmul.f32 %v1587_v22, %v1587_v22  ;;  %v1618_v11 = vmul.f32 %v1616_v4, %v1587_v22 }
 0xc33   :  { %v1593_v41 = vsel %vm52_vm0, %v1589_v40, 0.0 }
 0xc34   :  { %1594 = vadd.xlane.f32.xlu1 %v1593_v41 }
 0xcbd   :  { %v1592_v51 = vpop.xlane.xlu0 %1591 }
 0xcbe   :  { %v1596_v52 = vmul.f32 0.032258064, %v1592_v51 }
 0xcc0   :  { %3946 = vrsqrt.f32 %v1596_v52  ;;  %vm1600_vm13 = vcmp.eq.f32.partialorder %v1596_v52, inf  ;;  %v1603_v46 = vand.u32 2147483648, %v1596_v52  ;;  %vm1602_vm14 = vcmp.eq.f32.partialorder %v1596_v52, 0.0 }
 0xcc1   :  { %v1595_v47 = vpop.xlane.xlu1 %1594 }
 0xcc2   :  { %v1597_v53 = vmul.f32 0.032258064, %v1595_v47 }
 0xcc4   :  { %3948 = vrsqrt.f32 %v1597_v53  ;;  %vm1607_vm15 = vcmp.eq.f32.partialorder %v1597_v53, inf  ;;  %v1610_v62 = vand.u32 2147483648, %v1597_v53  ;;  %vm1609_vm1 = vcmp.eq.f32.partialorder %v1597_v53, 0.0 }
 0xcca   :  { %v3947_v54 = vpop.eup %3946 }
 0xccb   :  { %v1599_v56 = vmul.f32 %v3947_v54, %v1596_v52 }
 0xccd   :  { %v1601_v57 = vsel %vm1600_vm13, %v1596_v52, %v1599_v56 }
 0xcce   :  { %v3949_v58 = vpop.eup %3948  ;;  %v1604_v59 = vsel %vm1602_vm14, %v1603_v46, %v1601_v57 }
 0xccf   :  { %v1606_v60 = vmul.f32 %v3949_v58, %v1597_v53  ;;  %v1612_v61 = vadd.f32 1e-05, %v1604_v59 }
 0xcd1   :  { %v1608_v63 = vsel %vm1607_vm15, %v1597_v53, %v1606_v60  ;;  %3950 = vrcp.f32 %v1612_v61 }
 0xcd2   :  { %v1611_v2 = vsel %vm1609_vm1, %v1610_v62, %v1608_v63 }
 0xcd3   :  { %v1613_v3 = vadd.f32 1e-05, %v1611_v2 }
 0xcd5   :  { %3952 = vrcp.f32 %v1613_v3 }
 0xcdb   :  { %v3951_v7 = vpop.eup %3950 }
 0xcdc   :  { %v1619_v10 = vmul.f32 %v3951_v7, %v1617_v6 }
 0xcde   :  { %v1622_v12 = vadd.f32 %v1621_v9, %v1619_v10 }
 0xcdf   :  { %v3953_v13 = vpop.eup %3952 }
 0xce0   :  { %v1620_v48 = vmul.f32 %v3953_v13, %v1618_v11  ;;  %3538 = vmatprep.mubr.msk.f32.mxu1 %vm52_vm0, %v1622_v12 }
 0xce2   :  { %v1623_v14 = vadd.f32 %v1621_v9, %v1620_v48 }
 0xce4   :  { %3539 = vmatmul.mubr.msk.f32.vlgmr.msra.gmra.mrb[12].mxu1 %vm52_vm0, %v1623_v14 }
 0xdb7   :  { %v4365_v15 = vpop.f32.mrb[12].mxu1 }
 0xdb8   :  { %v4367_v16 = vpop.f32.mrb[13].mxu1 }
 0xdb9   :  { %3545 = vmatprep.mubr.msk.f32.mxu1 %vm195_vm5, %v4367_v16  ;;  %v4373_v17 = vpack.i.bf16 %v4365_v15, %v4367_v16 }
 0xdbb   :  { %3864 = vrot.lane.b32.xlu1 %v4373_v17, %s4043_s26  ;;  %3859 = vrot.lane.b32.xlu0 %v4373_v17, %s4044_s27 }
 0xdbf   :  { %1917 = vrot.lane.b32.xlu1 %v4367_v16, %s4045_s28  ;;  %3869 = vrot.lane.b32.xlu0 %v4373_v17, %s4046_s29 }
 0xdc3   :  { %1919 = vrot.lane.b32.xlu1 %v4365_v15, %s4045_s28  ;;  %2285 = vrot.lane.b32.xlu0 %v4365_v15, %s4047_s30 }
 0xdc7   :  { %2283 = vrot.lane.b32.xlu1 %v4367_v16, %s4047_s30 }
 0xe2d   :  { %v3865_v18 = vpop.permute.xlu1 %3864  ;;  %v3860_v19 = vpop.permute.xlu0 %3859 }
 0xe2e   :  { %v3867_v21 = vunpack.i.h.bf16 %v3865_v18  ;;  %v3866_v23 = vunpack.i.l.bf16 %v3865_v18  ;;  %v3862_v24 = vunpack.i.h.bf16 %v3860_v19  ;;  %v3861_v25 = vunpack.i.l.bf16 %v3860_v19 }
 0xe30   :  { %v3727_v26 = vpack.c.bf16 %v3862_v24, %v3861_v25  ;;  %v3737_v27 = vpack.c.bf16 %v3867_v21, %v3866_v23 }
 0xe31   :  { %v3870_v28 = vpop.permute.xlu0 %3869  ;;  %v1918_v29 = vpop.permute.xlu1 %1917 }
 0xe32   :  { %3729 = vmatprep.subr.msk.bf16.mxu1 %vm4168_vm6, %v3727_v26  ;;  %v3872_v1 = vunpack.i.h.bf16 %v3870_v28  ;;  %v3871_v30 = vunpack.i.l.bf16 %v3870_v28 }
 0xe33   :  { %3732 = vmatpush3.bf16.xpose.msk.msra.mxu1 %vm4168_vm6, %v3727_v26 }
 0xe34   :  { %3739 = vmatprep.subr.msk.bf16.mxu1 %vm4168_vm6, %v3737_v27  ;;  %v3747_v32 = vpack.c.bf16 %v3872_v1, %v3871_v30 }
 0xe35   :  { %v1920_v33 = vpop.permute.xlu1 %1919  ;;  %v2286_v35 = vpop.permute.xlu0 %2285 }
 0xe39   :  { %v2284_v34 = vpop.permute.xlu1 %2283 }
 0xe3a   :  { %3546 = vmatmul.mubr.msk.f32.vlgmr.msra.gmra.mrb[14].mxu1 %vm195_vm5, %v4365_v15 }
 0xe3b   :  { %3742 = vmatpush3.bf16.xpose.msk.msra.mxu1 %vm4168_vm6, %v3737_v27  ;;  %3559 = vmatprep.mubr.msk.f32.mxu1 %vm195_vm5, %v1918_v29 }
 0xe3c   :  { %3749 = vmatprep.subr.msk.bf16.mxu1 %vm4168_vm6, %v3747_v32 }
 0xe42   :  { %3560 = vmatmul.mubr.msk.f32.vlgmr.msra.gmra.mrb[16].mxu1 %vm195_vm5, %v1920_v33 }
 0xe43   :  { %3752 = vmatpush3.bf16.xpose.msk.msra.mxu1 %vm4168_vm6, %v3747_v32  ;;  %3583 = vmatprep.mubr.msk.f32.mxu1 %vm195_vm5, %v2284_v34 }
 0xe4a   :  { %3584 = vmatmul.mubr.msk.f32.vlgmr.msra.gmra.mrb[18].mxu1 %vm195_vm5, %v2286_v35 }
 0xf0d   :  { %v3547_v36 = vpop.f32.mrb[14].mxu1 }
 0xf0e   :  { %v1805_v37 = vmul.f32 0.35355338, %v3547_v36  ;;  %v1795_v38 = vpop.f32.mrb[15].mxu1 }
 0xf0f   :  { %v1804_v39 = vmul.f32 0.35355338, %v1795_v38 }
 0xf10   :  { %v1807_v22 = vadd.f32 %v1805_v37, %v4193_v5 }
 0xf11   :  { %v1806_v20 = vadd.f32 %v1804_v39, %v4198_v8 }
 0xf12   :  { %v1811_v40 = vsel %vm283_vm7, %v1807_v22, -inf }
 0xf13   :  { %1812 = vmax.xlane.f32.xlu0 %v1811_v40  ;;  %v1808_v41 = vsel %vm283_vm7, %v1806_v20, -inf }
 0xf14   :  { %1809 = vmax.xlane.f32.xlu1 %v1808_v41 }
 0xf15   :  { %v3561_v42 = vpop.f32.mrb[16].mxu1 }
 0xf16   :  { %v1999_v43 = vpop.f32.mrb[17].mxu1  ;;  %v2009_v44 = vmul.f32 0.35355338, %v3561_v42 }
 0xf17   :  { %v2008_v45 = vmul.f32 0.35355338, %v1999_v43 }
 0xf18   :  { %v2011_v51 = vadd.f32 %v2009_v44, %v4193_v5 }
 0xf19   :  { %v2010_v49 = vadd.f32 %v2008_v45, %v4198_v8 }
 0xf1a   :  { %v2015_v53 = vsel %vm283_vm7, %v2011_v51, -inf }
 0xf1b   :  { %v2012_v50 = vsel %vm283_vm7, %v2010_v49, -inf }
 0xf1c   :  { %2013 = vmax.xlane.f32.xlu0 %v2012_v50 }
 0xf1d   :  { %v3585_v52 = vpop.f32.mrb[18].mxu1 }
 0xf1e   :  { %v2365_v47 = vpop.f32.mrb[19].mxu1  ;;  %v2375_v18 = vmul.f32 0.35355338, %v3585_v52 }
 0xf1f   :  { %v2374_v48 = vmul.f32 0.35355338, %v2365_v47 }
 0xf20   :  { %2016 = vmax.xlane.f32.xlu0 %v2015_v53  ;;  %v2377_v21 = vadd.f32 %v2375_v18, %v4193_v5 }
 0xf21   :  { %v2376_v14 = vadd.f32 %v2374_v48, %v4198_v8 }
 0xf22   :  { %v2381_v23 = vsel %vm283_vm7, %v2377_v21, -inf }
 0xf23   :  { %v2378_v19 = vsel %vm283_vm7, %v2376_v14, -inf }
 0xfa0   :  { %v1813_v54 = vpop.xlane.xlu0 %1812 }
 0xfa1   :  { %v1815_v56 = vsub.f32 %v1807_v22, %v1813_v54  ;;  %v1810_v46 = vpop.xlane.xlu1 %1809 }
 0xfa2   :  { %v1814_v57 = vsub.f32 %v1806_v20, %v1810_v46  ;;  %v3219_v46 = vld [vmem:[%s4571_s3 + $0x20] sm:$0xff] }
 0xfa3   :  { %v1818_v58 = vmul.f32 1.442695, %v1815_v56  ;;  %v3220_v56 = vld [vmem:[%s4571_s3 + $0x28] sm:$0xff] }
 0xfa4   :  { %v1816_v59 = vmul.f32 1.442695, %v1814_v57 }
 0xfa5   :  { %3954 = vpow2.f32 %v1818_v58 }
 0xfa6   :  { %3956 = vpow2.f32 %v1816_v59 }
 0xfa9   :  { %v2014_v60 = vpop.xlane.xlu0 %2013 }
 0xfaa   :  { %v2018_v61 = vsub.f32 %v2010_v49, %v2014_v60 }
 0xfac   :  { %v2020_v62 = vmul.f32 1.442695, %v2018_v61 }
 0xfad   :  { %v2017_v63 = vpop.xlane.xlu0 %2016 }
 0xfae   :  { %3958 = vpow2.f32 %v2020_v62  ;;  %v2019_v2 = vsub.f32 %v2011_v51, %v2017_v63 }
 0xfaf   :  { %v3955_v3 = vpop.eup %3954 }
 0xfb0   :  { %v3957_v4 = vpop.eup %3956  ;;  %v2022_v6 = vmul.f32 1.442695, %v2019_v2  ;;  %v1823_v7 = vsel %vm283_vm7, %v3955_v3, 0.0 }
 0xfb1   :  { %1824 = vadd.xlane.f32.xlu0 %v1823_v7  ;;  %v1820_v9 = vsel %vm283_vm7, %v3957_v4, 0.0 }
 0xfb2   :  { %3960 = vpow2.f32 %v2022_v6  ;;  %1821 = vadd.xlane.f32.xlu1 %v1820_v9 }
 0xfb8   :  { %v3959_v10 = vpop.eup %3958 }
 0xfb9   :  { %v2024_v11 = vsel %vm283_vm7, %v3959_v10, 0.0 }
 0xfba   :  { %2025 = vadd.xlane.f32.xlu1 %v2024_v11 }
 0xfbc   :  { %v3961_v12 = vpop.eup %3960 }
 0xfbd   :  { %v2027_v13 = vsel %vm283_vm7, %v3961_v12, 0.0 }
 0xfbe   :  { %2028 = vadd.xlane.f32.xlu0 %v2027_v13 }
 0xfcb   :  { %3874 = vrot.lane.b32.xlu1 %v4373_v17, %s4048_s14  ;;  %s3257_s14 = sld [smem:[#allocation2 + $0x6]] }
 0xfcf   :  { %3884 = vrot.lane.b32.xlu1 %v4373_v17, %s4049_s15  ;;  %s3258_s15 = sld [smem:[#allocation2 + $0x7]] }
 0xfd3   :  { %2570 = vrot.lane.b32.xlu1 %v4367_v16, %s4050_s8 }
 0xfd4   :  { %3879 = vrot.lane.b32.xlu0 %v4373_v17, %s4051_s16 }
 0xfd7   :  { %2572 = vrot.lane.b32.xlu1 %v4365_v15, %s4050_s8 }
 0xff3   :  { %2379 = vmax.xlane.f32.xlu0 %v2378_v19  ;;  %v4003_v19 = vld [vmem:[%s4569_s1 + $0x8] sm:$0xff] }
 0xffb   :  { %2382 = vmax.xlane.f32.xlu1 %v2381_v23 }
0x103e   :  { %v1825_v16 = vpop.xlane.xlu0 %1824 }
0x103f   :  { %v1822_v24 = vpop.xlane.xlu1 %1821 }
0x1040   :  { %3962 = vrcp.f32 %v1822_v24 }
0x1041   :  { %3964 = vrcp.f32 %v1825_v16  ;;  %v3221_v16 = vld [vmem:[%s4571_s3 + $0x30] sm:$0xff] }
0x1047   :  { %v2026_v25 = vpop.xlane.xlu1 %2025 }
0x1048   :  { %3966 = vrcp.f32 %v2026_v25 }
0x104a   :  { %v3963_v26 = vpop.eup %3962 }
0x104b   :  { %v2029_v15 = vpop.xlane.xlu0 %2028  ;;  %v3875_v27 = vpop.permute.xlu1 %3874  ;;  %v1828_v28 = vmul.f32 %v3963_v26, %v3957_v4 }
0x104c   :  { %3968 = vrcp.f32 %v2029_v15  ;;  %v3877_v8 = vunpack.i.h.bf16 %v3875_v27  ;;  %v3876_v29 = vunpack.i.l.bf16 %v3875_v27  ;;  %v3965_v5 = vpop.eup %3964 }
0x104d   :  { %3552 = vmatprep.mubr.msk.f32.mxu0 %vm283_vm7, %v1828_v28  ;;  %v1829_v38 = vmul.f32 %v3965_v5, %v3955_v3 }
0x104e   :  { %v3733_v1 = vpack.c.bf16 %v3877_v8, %v3876_v29 }
0x104f   :  { %v3880_v30 = vpop.permute.xlu0 %3879  ;;  %v3885_v32 = vpop.permute.xlu1 %3884 }
0x1050   :  { %v3882_v33 = vunpack.i.h.bf16 %v3880_v30  ;;  %v3881_v34 = vunpack.i.l.bf16 %v3880_v30  ;;  %v3887_v35 = vunpack.i.h.bf16 %v3885_v32  ;;  %v3886_v36 = vunpack.i.l.bf16 %v3885_v32  ;;  %3734 = vmatprep.subr.bf16.mxu0 %v3733_v1 }
0x1051   :  { %3736 = vmatpush3.bf16.msra.mxu0 %v3733_v1 }
0x1052   :  { %v3967_v37 = vpop.eup %3966  ;;  %v3743_v39 = vpack.c.bf16 %v3882_v33, %v3881_v34  ;;  %v3757_v22 = vpack.c.bf16 %v3887_v35, %v3886_v36 }
0x1053   :  { %v2571_v20 = vpop.permute.xlu1 %2570  ;;  %v2032_v40 = vmul.f32 %v3967_v37, %v3959_v10 }
0x1054   :  { %3553 = vmatmul.mubr.msk.f32.vlgmr.msra.gmra.mrb[12].mxu0 %vm283_vm7, %v1829_v38  ;;  %3744 = vmatprep.subr.bf16.mxu0 %v3743_v39 }
0x1055   :  { %3759 = vmatprep.subr.msk.bf16.mxu1 %vm4168_vm6, %v3757_v22  ;;  %3602 = vmatprep.mubr.msk.f32.mxu1 %vm195_vm5, %v2571_v20 }
0x1056   :  { %v3969_v41 = vpop.eup %3968  ;;  %3746 = vmatpush3.bf16.msra.mxu0 %v3743_v39  ;;  %3566 = vmatprep.mubr.msk.f32.mxu0 %vm283_vm7, %v2032_v40 }
0x1057   :  { %v2033_v42 = vmul.f32 %v3969_v41, %v3961_v12  ;;  %3762 = vmatpush3.bf16.xpose.msk.msra.mxu1 %vm4168_vm6, %v3757_v22  ;;  %v2573_v43 = vpop.permute.xlu1 %2572  ;;  %3569 = vmatprep.subr.mxu0 %v3220_v56  ;;  %v4002_v12 = vld [vmem:[%s4569_s1] sm:$0xff]  ;;  %v3222_v22 = vld [vmem:[%s4571_s3 + $0x38] sm:$0xff] }
0x1059   :  { %3567 = vmatmul.mubr.msk.f32.vlgmr.msra.gmra.mrb[14].mxu0 %vm283_vm7, %v2033_v42 }
0x105a   :  { %3570 = vmatpush3.msra.mxu0 %v3220_v56 }
0x105b   :  { %3574 = vmatprep.subr.mxu0 %v3219_v46 }
0x105e   :  { %3603 = vmatmul.mubr.msk.f32.vlgmr.msra.gmra.mrb[20].mxu1 %vm195_vm5, %v2573_v43 }
0x1080   :  { %v2380_v44 = vpop.xlane.xlu0 %2379 }
0x1081   :  { %v2384_v45 = vsub.f32 %v2376_v14, %v2380_v44 }
0x1083   :  { %v2386_v51 = vmul.f32 1.442695, %v2384_v45 }
0x1088   :  { %v2383_v49 = vpop.xlane.xlu1 %2382 }
0x1089   :  { %v2385_v50 = vsub.f32 %v2377_v21, %v2383_v49 }
0x108b   :  { %v2388_v52 = vmul.f32 1.442695, %v2385_v50 }
0x108d   :  { %3970 = vpow2.f32 %v2388_v52 }
0x108e   :  { %3972 = vpow2.f32 %v2386_v51 }
0x1097   :  { %v3971_v47 = vpop.eup %3970 }
0x1098   :  { %v2393_v53 = vsel %vm283_vm7, %v3971_v47, 0.0  ;;  %v3973_v54 = vpop.eup %3972 }
0x1099   :  { %2394 = vadd.xlane.f32.xlu0 %v2393_v53  ;;  %v2390_v55 = vsel %vm283_vm7, %v3973_v54, 0.0 }
0x109d   :  { %2391 = vadd.xlane.f32.xlu0 %v2390_v55 }
0x10b3   :  { %3889 = vrot.lane.b32.xlu0 %v4373_v17, %s4052_s20 }
0x1126   :  { %v2395_v57 = vpop.xlane.xlu0 %2394 }
0x1127   :  { %v3554_v58 = vpop.f32.mrb[12].mxu0 }
0x1128   :  { %v1908_v59 = vpop.f32.mrb[13].mxu0 }
0x112a   :  { %v2392_v60 = vpop.xlane.xlu0 %2391 }
0x112b   :  { %3974 = vrcp.f32 %v2392_v60  ;;  %v3260_v60 = vld [vmem:[%s4572_s4 + $0x28] sm:$0xff] }
0x112c   :  { %3976 = vrcp.f32 %v2395_v57  ;;  %v3568_v61 = vpop.f32.mrb[14].mxu0 }
0x112d   :  { %v2112_v62 = vpop.f32.mrb[15].mxu0 }
0x112e   :  { %v3890_v63 = vpop.permute.xlu0 %3889  ;;  %3571 = vmatprep.mubr.msk.f32.mxu0 %vm195_vm5, %v2112_v62 }
0x112f   :  { %v3892_v2 = vunpack.i.h.bf16 %v3890_v63  ;;  %v3891_v3 = vunpack.i.l.bf16 %v3890_v63  ;;  %3572 = vmatmul.mubr.msk.f32.vlgmr.msra.gmra.mrb[16].mxu0 %vm195_vm5, %v3568_v61  ;;  %v3261_v61 = vld [vmem:[%s4572_s4 + $0x30] sm:$0xff]  ;;  %v3262_v63 = vld [vmem:[%s4572_s4 + $0x38] sm:$0xff] }
0x1130   :  { %3576 = vmatprep.mubr.msk.f32.mxu0 %vm195_vm5, %v1908_v59  ;;  %3575 = vmatpush3.msra.mxu0 %v3219_v46  ;;  %v3259_v59 = vld [vmem:[%s4572_s4 + $0x20] sm:$0xff] }
0x1131   :  { %v3753_v4 = vpack.c.bf16 %v3892_v2, %v3891_v3  ;;  %v3604_v6 = vpop.f32.mrb[20].mxu1  ;;  %v3767_v62 = vpack.c.bf16 %v3260_v60, %v3259_v59  ;;  %v3771_v2 = vpack.c.bf16 %v3262_v63, %v3261_v61  ;;  %v3267_v3 = vld [vmem:[%s4574_s6 + $0x40] sm:$0xff] }
0x1132   :  { %v2652_v7 = vpop.f32.mrb[21].mxu1  ;;  %v2662_v9 = vmul.f32 0.35355338, %v3604_v6  ;;  %v3269_v6 = vld [vmem:[%s4574_s6 + $0x50] sm:$0xff] }
0x1133   :  { %v2661_v10 = vmul.f32 0.35355338, %v2652_v7  ;;  %3754 = vmatprep.subr.bf16.mxu0 %v3753_v4  ;;  %3768 = vmatprep.subr.bf16.mxu1 %v3767_v62 }
0x1134   :  { %v2664_v21 = vadd.f32 %v4003_v19, %v2662_v9  ;;  %3770 = vmatpush3.bf16.msra.mxu1 %v3767_v62  ;;  %v3270_v9 = vld [vmem:[%s4574_s6 + $0x58] sm:$0xff] }
0x1135   :  { %v3975_v11 = vpop.eup %3974  ;;  %v2663_v13 = vadd.f32 %v4002_v12, %v2661_v10  ;;  %3772 = vmatprep.subr.bf16.mxu1 %v3771_v2  ;;  %v3779_v10 = vpack.c.bf16 %v3270_v9, %v3269_v6  ;;  %v3272_v12 = vld [vmem:[%s4574_s6 + $0x68] sm:$0xff] }
0x1136   :  { %v3977_v48 = vpop.eup %3976  ;;  %v2398_v14 = vmul.f32 %v3975_v11, %v3973_v54  ;;  %v2668_v24 = vsel %vm283_vm7, %v2664_v21, -inf  ;;  %v3271_v11 = vld [vmem:[%s4574_s6 + $0x60] sm:$0xff] }
0x1137   :  { %v2665_v18 = vsel %vm283_vm7, %v2663_v13, -inf  ;;  %3577 = vmatmul.mubr.msk.f32.vlgmr.msra.gmra.mrb[16].mxu0 %vm195_vm5, %v3554_v58  ;;  %v2399_v23 = vmul.f32 %v3977_v48, %v3971_v47 }
0x1138   :  { %2666 = vmax.xlane.f32.xlu1 %v2665_v18  ;;  %3756 = vmatpush3.bf16.msra.mxu0 %v3753_v4  ;;  %v3268_v4 = vld [vmem:[%s4574_s6 + $0x48] sm:$0xff] }
0x1139   :  { %3590 = vmatprep.mubr.msk.f32.mxu0 %vm283_vm7, %v2398_v14  ;;  %3593 = vmatprep.subr.mxu0 %v3221_v16  ;;  %v3775_v7 = vpack.c.bf16 %v3268_v4, %v3267_v3 }
0x113a   :  { %3774 = vmatpush3.bf16.msra.mxu1 %v3771_v2 }
0x113b   :  { %3591 = vmatmul.mubr.msk.f32.vlgmr.msra.gmra.mrb[18].mxu0 %vm283_vm7, %v2399_v23 }
0x113c   :  { %2669 = vmax.xlane.f32.xlu1 %v2668_v24  ;;  %3594 = vmatpush3.msra.mxu0 %v3221_v16 }
0x11c5   :  { %v2667_v25 = vpop.xlane.xlu1 %2666 }
0x11c6   :  { %v2671_v26 = vsub.f32 %v2663_v13, %v2667_v25  ;;  %v3783_v13 = vpack.c.bf16 %v3272_v12, %v3271_v11 }
0x11c8   :  { %v2673_v28 = vmul.f32 1.442695, %v2671_v26 }
0x11c9   :  { %v2670_v15 = vpop.xlane.xlu1 %2669 }
0x11ca   :  { %v2672_v27 = vsub.f32 %v2664_v21, %v2670_v15 }
0x11cc   :  { %v2675_v8 = vmul.f32 1.442695, %v2672_v27 }
0x11ce   :  { %3978 = vpow2.f32 %v2675_v8 }
0x11cf   :  { %3980 = vpow2.f32 %v2673_v28 }
0x11d8   :  { %v3979_v29 = vpop.eup %3978 }
0x11d9   :  { %v2680_v1 = vsel %vm283_vm7, %v3979_v29, 0.0  ;;  %v3981_v5 = vpop.eup %3980 }
0x11da   :  { %2681 = vadd.xlane.f32.xlu1 %v2680_v1  ;;  %v2677_v30 = vsel %vm283_vm7, %v3981_v5, 0.0 }
0x11de   :  { %2678 = vadd.xlane.f32.xlu1 %v2677_v30 }
0x11ef   :  { %3894 = vrot.lane.b32.xlu1 %v4373_v17, %s4053_s23 }
0x120e   :  { %v3592_v32 = vpop.f32.mrb[18].mxu0 }
0x120f   :  { %v2478_v33 = vpop.f32.mrb[19].mxu0 }
0x1210   :  { %3595 = vmatprep.mubr.msk.f32.mxu0 %vm195_vm5, %v2478_v33  ;;  %v2904_v33 = vstv %s3258_s15 }
0x1211   :  { %3596 = vmatmul.mubr.msk.f32.vlgmr.msra.gmra.mrb[16].mxu0 %vm195_vm5, %v3592_v32 }
0x1267   :  { %v2682_v34 = vpop.xlane.xlu1 %2681 }
0x1268   :  { %3982 = vrcp.f32 %v2682_v34 }
0x126b   :  { %v2679_v35 = vpop.xlane.xlu1 %2678 }
0x126c   :  { %3984 = vrcp.f32 %v2679_v35 }
0x126f   :  { %v3895_v36 = vpop.permute.xlu1 %3894 }
0x1270   :  { %v3897_v37 = vunpack.i.h.bf16 %v3895_v36  ;;  %v3896_v38 = vunpack.i.l.bf16 %v3895_v36 }
0x1272   :  { %v3763_v39 = vpack.c.bf16 %v3897_v37, %v3896_v38  ;;  %v3983_v17 = vpop.eup %3982 }
0x1273   :  { %v2686_v41 = vmul.f32 %v3983_v17, %v3979_v29  ;;  %v3274_v17 = vld [vmem:[%s4574_s6 + $0x78] sm:$0xff] }
0x1274   :  { %3764 = vmatprep.subr.bf16.mxu0 %v3763_v39 }
0x1275   :  { %3766 = vmatpush3.bf16.msra.mxu0 %v3763_v39 }
0x1276   :  { %v3985_v20 = vpop.eup %3984  ;;  %3612 = vmatprep.subr.mxu0 %v3222_v22 }
0x1277   :  { %v2685_v40 = vmul.f32 %v3985_v20, %v3981_v5  ;;  %v2899_v5 = vstv %s3257_s14 }
0x1279   :  { %3609 = vmatprep.mubr.msk.f32.mxu0 %vm283_vm7, %v2685_v40  ;;  %v3264_v40 = vld [vmem:[%s4573_s5 + $0x1] ss:$0 sm:$0xff]  ;;  %s3279_s5 = sld [smem:[#allocation2 + $0x8]] }
0x127a   :  { %3610 = vmatmul.mubr.msk.f32.vlgmr.msra.gmra.mrb[20].mxu0 %vm283_vm7, %v2686_v41 }
0x127b   :  { %3613 = vmatpush3.msra.mxu0 %v3222_v22  ;;  %v3273_v22 = vld [vmem:[%s4574_s6 + $0x70] sm:$0xff]  ;;  %s3280_s6 = sld [smem:[#allocation2 + $0x9]] }
0x127c   :  { %3776 = vmatprep.subr.bf16.mxu0 %v3775_v7  ;;  %v3787_v20 = vpack.c.bf16 %v3274_v17, %v3273_v22 }
0x134d   :  { %v3611_v42 = vpop.f32.mrb[20].mxu0 }
0x134e   :  { %v2765_v43 = vpop.f32.mrb[21].mxu0 }
0x134f   :  { %3614 = vmatprep.mubr.msk.f32.mxu0 %vm195_vm5, %v2765_v43 }
0x1350   :  { %3615 = vmatmul.mubr.msk.f32.vlgmr.msra.gmra.mrb[16].mxu0 %vm195_vm5, %v3611_v42 }
0x1351   :  { %3778 = vmatpush3.bf16.msra.mxu0 %v3775_v7 }
0x1352   :  { %3780 = vmatprep.subr.bf16.mxu0 %v3779_v10 }
0x1355   :  { %3782 = vmatpush3.bf16.msra.mxu0 %v3779_v10 }
0x1356   :  { %3784 = vmatprep.subr.bf16.mxu0 %v3783_v13 }
0x1359   :  { %3786 = vmatpush3.bf16.msra.mxu0 %v3783_v13 }
0x135a   :  { %3788 = vmatprep.subr.bf16.mxu0 %v3787_v20 }
0x135d   :  { %3790 = vmatpush3.bf16.msra.mxu0 %v3787_v20 }
0x1423   :  { %v3616_v44 = vpop.f32.mrb[16].mxu0 }
0x1424   :  { %v4484_v45 = vadd.f32 %v3616_v44, %v4341_v31  ;;  %v2846_v49 = vpop.f32.mrb[17].mxu0 }
0x1425   :  { %v4487_v50 = vadd.f32 %v2846_v49, %v4338_v0 }
0x1426   :  { %v2864_v51 = vsel %vm52_vm0, %v4484_v45, 0.0 }
0x1427   :  { %2865 = vadd.xlane.f32.xlu1 %v2864_v51  ;;  %v2861_v52 = vsel %vm52_vm0, %v4487_v50, 0.0 }
0x1428   :  { %2862 = vadd.xlane.f32.xlu0 %v2861_v52  ;;  %v3276_v52 = vld [vmem:[%s4575_s7 + $0x1] ss:$0 sm:$0xff]  ;;  %s4054_s7 = smov [#allocation5]  }
0x1429   :  { %s3158_s17 = sshll.u32 %s4054_s7, 4  ;;  %s3159_s17 = int_to_ptr.vmem [resolvable:$true] %s3158_s17 }
0x142a   :  { %s4016_s18 = scalar_lea.vmem %s3159_s17, 256  ;;  %p4021_p6 = scmp.lt.s32.totalorder %s3159_s17, %s3159_s17 }
0x142b   :  { %p4017_p5 = scmp.ne.s32.totalorder %s3159_s17, %s4016_s18  ;;  %p4022_p7 = scmp.lt.s32.totalorder %s4016_s18, %s4016_s18 }
0x142d   :  { %p4023_p8 = por %p4022_p7, %p4021_p6 }
0x142f   :  { %p4024_p9 = pnand %p4023_p8, %p4017_p5 }
0x14b4   :  { %v2866_v47 = vpop.xlane.xlu1 %2865 }
0x14b5   :  { %v2868_v53 = vmul.f32 0.03125, %v2866_v47  ;;  %v2863_v54 = vpop.xlane.xlu0 %2862 }
0x14b6   :  { %v2867_v55 = vmul.f32 0.03125, %v2863_v54 }
0x14b7   :  { %v4494_v56 = vsub.f32 %v4484_v45, %v2868_v53 }
0x14b8   :  { %v2869_v31 = vsub.f32 %v4487_v50, %v2867_v55 }
0x14b9   :  { %v2872_v57 = vmul.f32 %v4494_v56, %v4494_v56  ;;  %v2901_v35 = vmul.f32 %v2899_v5, %v4494_v56 }
0x14ba   :  { %v2871_v46 = vmul.f32 %v2869_v31, %v2869_v31  ;;  %v2900_v30 = vmul.f32 %v2899_v5, %v2869_v31 }
0x14bb   :  { %v2876_v58 = vsel %vm52_vm0, %v2872_v57, 0.0 }
0x14bc   :  { %v2873_v0 = vsel %vm52_vm0, %v2871_v46, 0.0 }
0x14bd   :  { %2874 = vadd.xlane.f32.xlu0 %v2873_v0 }
0x14c1   :  { %2877 = vadd.xlane.f32.xlu0 %v2876_v58 }
0x154a   :  { %v2875_v48 = vpop.xlane.xlu0 %2874 }
0x154b   :  { %v2879_v14 = vmul.f32 0.032258064, %v2875_v48 }
0x154d   :  { %3986 = vrsqrt.f32 %v2879_v14  ;;  %vm2883_vm2 = vcmp.eq.f32.partialorder %v2879_v14, inf  ;;  %v2886_v24 = vand.u32 2147483648, %v2879_v14  ;;  %vm2885_vm3 = vcmp.eq.f32.partialorder %v2879_v14, 0.0 }
0x154e   :  { %v2878_v18 = vpop.xlane.xlu0 %2877 }
0x154f   :  { %v2880_v19 = vmul.f32 0.032258064, %v2878_v18 }
0x1551   :  { %3988 = vrsqrt.f32 %v2880_v19  ;;  %vm2890_vm4 = vcmp.eq.f32.partialorder %v2880_v19, inf  ;;  %v2893_v28 = vand.u32 2147483648, %v2880_v19  ;;  %vm2892_vm5 = vcmp.eq.f32.partialorder %v2880_v19, 0.0 }
0x1557   :  { %v3987_v21 = vpop.eup %3986 }
0x1558   :  { %v2882_v23 = vmul.f32 %v3987_v21, %v2879_v14 }
0x155a   :  { %v2884_v16 = vsel %vm2883_vm2, %v2879_v14, %v2882_v23 }
0x155b   :  { %v3989_v25 = vpop.eup %3988  ;;  %v2887_v26 = vsel %vm2885_vm3, %v2886_v24, %v2884_v16  ;;  %v3143_v16 = vstv %s3279_s5 }
0x155c   :  { %v2889_v15 = vmul.f32 %v3989_v25, %v2880_v19  ;;  %v2895_v27 = vadd.f32 1e-05, %v2887_v26 }
0x155e   :  { %v2891_v8 = vsel %vm2890_vm4, %v2880_v19, %v2889_v15  ;;  %3990 = vrcp.f32 %v2895_v27  ;;  %v3148_v15 = vstv %s3280_s6 }
0x155f   :  { %v2894_v29 = vsel %vm2892_vm5, %v2893_v28, %v2891_v8 }
0x1560   :  { %v2896_v1 = vadd.f32 1e-05, %v2894_v29 }
0x1562   :  { %3992 = vrcp.f32 %v2896_v1 }
0x1568   :  { %v3991_v32 = vpop.eup %3990 }
0x1569   :  { %v2902_v34 = vmul.f32 %v3991_v32, %v2900_v30 }
0x156b   :  { %v2905_v36 = vadd.f32 %v2904_v33, %v2902_v34 }
0x156c   :  { %v3993_v37 = vpop.eup %3992 }
0x156d   :  { %v2903_v38 = vmul.f32 %v3993_v37, %v2901_v35  ;;  %3625 = vmatprep.mubr.msk.f32.mxu1 %vm52_vm0, %v2905_v36 }
0x156f   :  { %v2906_v39 = vadd.f32 %v2904_v33, %v2903_v38 }
0x1571   :  { %3626 = vmatmul.mubr.msk.f32.vlgmr.msra.gmra.mrb[22].mxu1 %vm52_vm0, %v2906_v39 }
0x1644   :  { %v3627_v41 = vpop.f32.mrb[22].mxu1 }
0x1645   :  { %v2998_v42 = vadd.f32 %v3627_v41, %v3264_v40  ;;  %v2992_v43 = vpop.f32.mrb[23].mxu1 }
0x1646   :  { %v2993_v44 = vadd.f32 %v3264_v40, %v2992_v43 }
0x1647   :  { %v3002_v51 = vmax.f32 %v2998_v42, 0.0 }
0x1648   :  { %v3001_v49 = vmax.f32 %v2993_v44, 0.0 }
0x164a   :  { %3644 = vmatprep.mubr.msk.f32.mxu0 %vm1492_vm12, %v3001_v49 }
0x164b   :  { %3645 = vmatmul.mubr.msk.f32.vlgmr.msra.gmra.mrb[22].mxu0 %vm1492_vm12, %v3002_v51 }
0x171e   :  { %v3646_v47 = vpop.f32.mrb[22].mxu0 }
0x171f   :  { %v3092_v53 = vpop.f32.mrb[23].mxu0  ;;  %v3098_v54 = vadd.f32 %v3646_v47, %v3276_v52 }
0x1720   :  { %v3093_v55 = vadd.f32 %v3276_v52, %v3092_v53 }
0x1721   :  { %v3102_v46 = vadd.f32 %v3098_v54, %v4484_v45 }
0x1722   :  { %v3101_v56 = vadd.f32 %v3093_v55, %v4487_v50 }
0x1723   :  { %v3108_v0 = vsel %vm52_vm0, %v3102_v46, 0.0 }
0x1724   :  { %v3105_v31 = vsel %vm52_vm0, %v3101_v56, 0.0 }
0x1725   :  { %3106 = vadd.xlane.f32.xlu0 %v3105_v31 }
0x1729   :  { %3109 = vadd.xlane.f32.xlu0 %v3108_v0 }
0x17b2   :  { %v3107_v57 = vpop.xlane.xlu0 %3106 }
0x17b3   :  { %v3111_v58 = vmul.f32 0.03125, %v3107_v57 }
0x17b5   :  { %v3113_v59 = vsub.f32 %v3101_v56, %v3111_v58 }
0x17b6   :  { %v3110_v60 = vpop.xlane.xlu0 %3109 }
0x17b7   :  { %v3112_v61 = vmul.f32 0.03125, %v3110_v60  ;;  %v3115_v62 = vmul.f32 %v3113_v59, %v3113_v59  ;;  %v3144_v25 = vmul.f32 %v3143_v16, %v3113_v59 }
0x17b9   :  { %v3114_v63 = vsub.f32 %v3102_v46, %v3112_v61  ;;  %v3117_v2 = vsel %vm52_vm0, %v3115_v62, 0.0 }
0x17ba   :  { %3118 = vadd.xlane.f32.xlu0 %v3117_v2 }
0x17bb   :  { %v3116_v3 = vmul.f32 %v3114_v63, %v3114_v63  ;;  %v3145_v28 = vmul.f32 %v3143_v16, %v3114_v63 }
0x17bd   :  { %v3120_v50 = vsel %vm52_vm0, %v3116_v3, 0.0 }
0x17be   :  { %3121 = vadd.xlane.f32.xlu1 %v3120_v50 }
0x1847   :  { %v3119_v4 = vpop.xlane.xlu0 %3118 }
0x1848   :  { %v3123_v45 = vmul.f32 0.032258064, %v3119_v4 }
0x184a   :  { %3994 = vrsqrt.f32 %v3123_v45  ;;  %vm3127_vm6 = vcmp.eq.f32.partialorder %v3123_v45, inf  ;;  %v3130_v11 = vand.u32 2147483648, %v3123_v45  ;;  %vm3129_vm7 = vcmp.eq.f32.partialorder %v3123_v45, 0.0 }
0x184b   :  { %v3122_v6 = vpop.xlane.xlu1 %3121 }
0x184c   :  { %v3124_v7 = vmul.f32 0.032258064, %v3122_v6 }
0x184e   :  { %3996 = vrsqrt.f32 %v3124_v7  ;;  %vm3134_vm8 = vcmp.eq.f32.partialorder %v3124_v7, inf  ;;  %v3137_v19 = vand.u32 2147483648, %v3124_v7  ;;  %vm3136_vm9 = vcmp.eq.f32.partialorder %v3124_v7, 0.0 }
0x1854   :  { %v3995_v9 = vpop.eup %3994 }
0x1855   :  { %v3126_v10 = vmul.f32 %v3995_v9, %v3123_v45 }
0x1857   :  { %v3128_v12 = vsel %vm3127_vm6, %v3123_v45, %v3126_v10 }
0x1858   :  { %v3997_v13 = vpop.eup %3996  ;;  %v3131_v48 = vsel %vm3129_vm7, %v3130_v11, %v3128_v12 }
0x1859   :  { %v3139_v14 = vadd.f32 1e-05, %v3131_v48  ;;  %v3133_v18 = vmul.f32 %v3997_v13, %v3124_v7 }
0x185b   :  { %v3135_v21 = vsel %vm3134_vm8, %v3124_v7, %v3133_v18  ;;  %3998 = vrcp.f32 %v3139_v14 }
0x185c   :  { %v3138_v23 = vsel %vm3136_vm9, %v3137_v19, %v3135_v21 }
0x185d   :  { %v3140_v24 = vadd.f32 1e-05, %v3138_v23 }
0x185f   :  { %4000 = vrcp.f32 %v3140_v24 }
0x1865   :  { %v3999_v26 = vpop.eup %3998 }
0x1866   :  { %v3146_v27 = vmul.f32 %v3999_v26, %v3144_v25 }
0x1868   :  { %v3149_v8 = vadd.f32 %v3148_v15, %v3146_v27 }
0x1869   :  { %v4001_v29 = vpop.eup %4000 }
0x186a   :  { %v3147_v1 = vmul.f32 %v4001_v29, %v3145_v28  ;;  %3151 = vst.msk [vmem:[#allocation5] sm:$0xff] %vm52_vm0, %v3149_v8 }
0x186c   :  { %v3150_v5 = vadd.f32 %v3148_v15, %v3147_v1 }
0x186e   :  { %3152 = vst.msk [vmem:[#allocation5 + $0x8] sm:$0xff] %vm52_vm0, %v3150_v5 }
0x186f   :  { %4027 = shalt.err (!%p4024_p9)
}
0x1870   :  { %s4028_s22 = scalar_lea.hbm %s4577_s9, 256 }
0x1871   :  { %p4029_p10 = scmp.ne.s32.totalorder %s4577_s9, %s4028_s22  ;;  %p4032_p11 = scmp.lt.u32.totalorder %s4028_s22, %s4577_s9 }
0x1873   :  { %p4034_p12 = pnand %p4032_p11, %p4029_p10 }
0x1875   :  { %4037 = shalt.err (!%p4034_p12)
}
0x1876   :  { %s4055_s2 = smov 128   ;;  %s4056_s12 = smov 8  }
0x1877   :  { %3164 = dma.vmem_to_hbm [thread:$0]  %s3159_s17, 256, %s4577_s9, [#allocation3], %s4055_s2, %s4055_s2, %s4056_s12  }
0x1878   :  { %4040 = dma.done.wait [#allocation3], 256  }
0x1879   :  { %4041 = vsyncadd [#allocation3], 4294967040 }
0x187a   :  { %3168 = vsyncpa [#allocation3], 1 }
0x187b   :  { %3169 = vsyncpa [#allocation4], 1 }

</bundles_post_ra>
